<compile_context>
chip_gen: v6e
topology: v6e:2x2x1
jax: 0.10.0
libtpu: 0.0.40
codegen_flags: <defaults>
</compile_context>

<pallas_src>
import jax
import jax.numpy as jnp
from jax.experimental import pallas as pl
from jax.experimental.pallas import tpu as pltpu

# --- config (mirrors get_config()) ---
H = 128           # hidden size
K = 100           # fc1 out features
I_F = 49          # I_F_num (input feature size)
T = 6             # timeStep
IFP = 128         # lane-padded input feature width
KP = 128          # lane-padded fc1 / fc2 output width
MAX_B_TILE = 512  # batch tile cap (sized for v7x 64 MiB VMEM headroom)


def _round_up(x, m):
    return (x + m - 1) // m * m


def interaction_lstm_kernel(track_ref, target_ref,
                            w_tgt_ref, b_tgt_ref,
                            w_ih_ref, w_hh_ref, b_lstm_ref,
                            w_fc1h_ref, w_fc1t_ref, b_fc1_ref,
                            w_fc2_ref, b_fc2_ref,
                            outs_ref, relu_ref):
    Bt = target_ref.shape[0]                       # batch tile (multiple of 8)

    # Activations arrive f32; cast once to bf16 for the MXU (f32 accumulation).
    track = track_ref[...].reshape(T * Bt, IFP).astype(jnp.bfloat16)  # t-major
    target = target_ref[...].astype(jnp.bfloat16)

    # target_fc: Linear(I_F -> H)  (off the recurrence critical path)
    target_out = (jnp.dot(target, w_tgt_ref[...],
                          preferred_element_type=jnp.float32)
                  + b_tgt_ref[...])                                   # (Bt, H)

    # Hoisted input projection: one (T*Bt, IFP) @ (IFP, 4H) matmul + bias.
    # Rows for step t are the contiguous, vreg-aligned slice [t*Bt : (t+1)*Bt].
    gates_x = (jnp.dot(track, w_ih_ref[...],
                       preferred_element_type=jnp.float32)
               + b_lstm_ref[...])                                     # (T*Bt, 4H)

    w_hh = w_hh_ref[...]                                              # (H, 4H) bf16
    # TODO(synk): hold w_hh in MXU weight registers across the T steps
    # (pltpu.matmul_push_rhs / matmul_acc_lhs / matmul_pop) to remove the
    # per-step weight staging from the serial critical path.

    h = jnp.zeros((Bt, H), jnp.float32)   # initial state None -> zeros
    c = jnp.zeros((Bt, H), jnp.float32)

    hs = []
    # T = 6 is static & small: Python unroll (full LLO scheduler visibility).
    for t in range(T):
        gates = gates_x[t * Bt:(t + 1) * Bt, :] + jnp.dot(
            h.astype(jnp.bfloat16), w_hh,
            preferred_element_type=jnp.float32)                       # (Bt, 4H)
        # Gate columns were permuted to (i, f, o, g) at prepare time:
        # one fused sigmoid over the first 3H lanes, one tanh over the last H.
        s_ifo = jax.nn.sigmoid(gates[:, :3 * H])
        i_g = s_ifo[:, :H]
        f_g = s_ifo[:, H:2 * H]
        o_g = s_ifo[:, 2 * H:3 * H]
        g_g = jnp.tanh(gates[:, 3 * H:])
        c = f_g * c + i_g * g_g
        h = o_g * jnp.tanh(c)                                         # r_out[:, t, :]
        hs.append(h)

    # Stack hidden states (t-major, each an exact vreg tile with Bt % 8 == 0)
    # and run the fc1 / ReLU / fc2 epilogue as batched (T*Bt)-row matmuls.
    h_all = jnp.concatenate(hs, axis=0).astype(jnp.bfloat16)          # (T*Bt, H)

    tgt_term = (jnp.dot(target_out.astype(jnp.bfloat16), w_fc1t_ref[...],
                        preferred_element_type=jnp.float32)
                + b_fc1_ref[...])                                     # (Bt, KP)

    fc1_h = jnp.dot(h_all, w_fc1h_ref[...],
                    preferred_element_type=jnp.float32)               # (T*Bt, KP)
    # Broadcast add over T instead of materializing a tiled copy.
    relu = jnp.maximum(fc1_h.reshape(T, Bt, KP) + tgt_term[None, :, :], 0.0)
    relu_ref[...] = relu                       # lane-dense single store

    out = (jnp.dot(relu.reshape(T * Bt, KP).astype(jnp.bfloat16), w_fc2_ref[...],
                   preferred_element_type=jnp.float32)
           + b_fc2_ref[...])                                          # (T*Bt, KP)
    outs_ref[...] = out.reshape(T, Bt, KP)


def prepare_params(params):
    """One-time weight preprocessing: gate permutation, zero-padding, bf16 cast."""
    (w_tgt, b_tgt, w_ih, w_hh, b_lstm, w_fc1, b_fc1, w_fc2, b_fc2) = params

    def perm_gates(w):   # PyTorch (i, f, g, o) -> (i, f, o, g) along last axis
        return jnp.concatenate(
            [w[..., :2 * H], w[..., 3 * H:4 * H], w[..., 2 * H:3 * H]], axis=-1)

    bf = lambda x: x.astype(jnp.bfloat16)

    w_tgt_p = bf(jnp.pad(w_tgt, ((0, IFP - I_F), (0, 0))))            # (IFP, H)
    w_ih_p = bf(jnp.pad(perm_gates(w_ih), ((0, IFP - I_F), (0, 0))))  # (IFP, 4H)
    w_hh_p = bf(perm_gates(w_hh))                                     # (H, 4H)
    b_lstm_p = perm_gates(b_lstm)                                     # (1, 4H) f32

    w_fc1h = bf(jnp.pad(w_fc1[:H, :], ((0, 0), (0, KP - K))))         # (H, KP)
    w_fc1t = bf(jnp.pad(w_fc1[H:, :], ((0, 0), (0, KP - K))))         # (H, KP)
    b_fc1_p = jnp.pad(b_fc1, ((0, 0), (0, KP - K)))                   # (1, KP)
    w_fc2_p = bf(jnp.pad(w_fc2, ((0, KP - K), (0, KP - 2))))          # (KP, KP)
    b_fc2_p = jnp.pad(b_fc2, ((0, 0), (0, KP - 2)))                   # (1, KP)

    return (w_tgt_p, b_tgt, w_ih_p, w_hh_p, b_lstm_p,
            w_fc1h, w_fc1t, b_fc1_p, w_fc2_p, b_fc2_p)


def interaction_lstm(track, target, prepared_params):
    B = track.shape[0]

    # Batch padded to a sublane multiple; tile sized for v7x's 64 MiB VMEM.
    b_tile = min(_round_up(B, 8), MAX_B_TILE)
    b_pad = _round_up(B, b_tile)
    grid = (b_pad // b_tile,)

    # t-major layout (T, B_pad, IFP): step-t rows are contiguous for the
    # hoisted projection; the batch (middle) axis is blocked by the grid.
    track_tm = jnp.transpose(track, (1, 0, 2))
    track_tm = jnp.pad(track_tm, ((0, 0), (0, b_pad - B), (0, IFP - I_F)))
    target_p = jnp.pad(target, ((0, b_pad - B), (0, IFP - I_F)))

    vmem = lambda: pl.BlockSpec(memory_space=pltpu.MemorySpace.VMEM)
    n_weights = len(prepared_params)

    outs_pad, relu_pad = pl.pallas_call(
        interaction_lstm_kernel,
        out_shape=(jax.ShapeDtypeStruct((T, b_pad, KP), jnp.float32),
                   jax.ShapeDtypeStruct((T, b_pad, KP), jnp.float32)),
        grid=grid,
        in_specs=[pl.BlockSpec((T, b_tile, IFP), lambda i: (0, i, 0)),
                  pl.BlockSpec((b_tile, IFP), lambda i: (i, 0))]
                 + [vmem() for _ in range(n_weights)],
        out_specs=(pl.BlockSpec((T, b_tile, KP), lambda i: (0, i, 0)),
                   pl.BlockSpec((T, b_tile, KP), lambda i: (0, i, 0))),
        compiler_params=pltpu.CompilerParams(
            dimension_semantics=("parallel",)),
    )(track_tm, target_p, *prepared_params)

    # Undo padding / t-major layout (cheap XLA slices; padded rows discarded).
    outs = outs_pad[:, :B, :2].transpose(1, 0, 2)                     # (B, T, 2)
    relu_outs = relu_pad[:, :B, :K].transpose(1, 0, 2)                # (B, T, K)
    return outs, relu_outs


def init_params(key):
    """Deterministic init (PyTorch-style uniform(-1/sqrt(fan_in), 1/sqrt(fan_in)))."""
    ks = jax.random.split(key, 10)

    def unif(k, shape, fan_in):
        bound = 1.0 / jnp.sqrt(fan_in)
        return jax.random.uniform(k, shape, jnp.float32, -bound, bound)

    w_tgt = unif(ks[0], (I_F, H), I_F)            # target_fc weight (transposed)
    b_tgt = unif(ks[1], (1, H), I_F)
    w_ih = unif(ks[2], (I_F, 4 * H), H)           # lstm weight_ih_l0^T
    w_hh = unif(ks[3], (H, 4 * H), H)             # lstm weight_hh_l0^T
    b_ih = unif(ks[4], (1, 4 * H), H)
    b_hh = unif(ks[5], (1, 4 * H), H)
    b_lstm = b_ih + b_hh
    w_fc1 = unif(ks[6], (2 * H, K), 2 * H)        # fc1 weight^T
    b_fc1 = unif(ks[7], (1, K), 2 * H)
    w_fc2 = unif(ks[8], (K, 2), K)                # fc2 weight^T
    b_fc2 = unif(ks[9], (1, 2), K)
    return (w_tgt, b_tgt, w_ih, w_hh, b_lstm, w_fc1, b_fc1, w_fc2, b_fc2)


def reference(track, target, params):
    """Pure-JAX f32 reference mirroring the PyTorch forward (gate order i,f,g,o)."""
    (w_tgt, b_tgt, w_ih, w_hh, b_lstm, w_fc1, b_fc1, w_fc2, b_fc2) = params
    target_out = target @ w_tgt + b_tgt
    B = track.shape[0]
    h = jnp.zeros((B, H), jnp.float32)
    c = jnp.zeros((B, H), jnp.float32)
    outs, relus = [], []
    for t in range(T):
        x = track[:, t, :]
        gates = x @ w_ih + h @ w_hh + b_lstm
        i = jax.nn.sigmoid(gates[:, :H])
        f = jax.nn.sigmoid(gates[:, H:2 * H])
        g = jnp.tanh(gates[:, 2 * H:3 * H])
        o = jax.nn.sigmoid(gates[:, 3 * H:4 * H])
        c = f * c + i * g
        h = o * jnp.tanh(c)
        fc1 = jnp.concatenate([h, target_out], axis=1) @ w_fc1 + b_fc1
        r = jnp.maximum(fc1, 0.0)
        relus.append(r)
        outs.append(r @ w_fc2 + b_fc2)
    return jnp.stack(outs, 1), jnp.stack(relus, 1)


if __name__ == "__main__":
    key = jax.random.PRNGKey(0)
    k_track, k_target, k_params = jax.random.split(key, 3)

    B = 2
    track = jax.random.normal(k_track, (B, T, I_F), jnp.float32)
    target = jax.random.normal(k_target, (B, I_F), jnp.float32)
    params = init_params(k_params)
    prepared = prepare_params(params)   # one-time weight prep (hoisted off the forward path)

    outs, relu_outs = interaction_lstm(track, target, prepared)
    jax.block_until_ready((outs, relu_outs))

    ref_outs, ref_relus = reference(track, target, params)
    assert outs.shape == (B, T, 2) and relu_outs.shape == (B, T, K)
    # bf16 MXU operands (f32 accumulation) -> looser tolerance than pure f32.
    assert jnp.allclose(outs, ref_outs, atol=3e-2, rtol=3e-2)
    assert jnp.allclose(relu_outs, ref_relus, atol=3e-2, rtol=3e-2)

    print("KERNEL_OK")
</pallas_src>

<mosaic_0001>
module attributes {stable_mosaic.version = 11 : i64} {
  func.func @interaction_lstm_kernel(%arg0: i32, %arg1: memref<6x8x128xf32, #tpu.memory_space<vmem>>, %arg2: memref<8x128xf32, #tpu.memory_space<vmem>>, %arg3: memref<128x128xbf16, #tpu.memory_space<vmem>>, %arg4: memref<1x128xf32, #tpu.memory_space<vmem>>, %arg5: memref<128x512xbf16, #tpu.memory_space<vmem>>, %arg6: memref<128x512xbf16, #tpu.memory_space<vmem>>, %arg7: memref<1x512xf32, #tpu.memory_space<vmem>>, %arg8: memref<128x128xbf16, #tpu.memory_space<vmem>>, %arg9: memref<128x128xbf16, #tpu.memory_space<vmem>>, %arg10: memref<1x128xf32, #tpu.memory_space<vmem>>, %arg11: memref<128x128xbf16, #tpu.memory_space<vmem>>, %arg12: memref<1x128xf32, #tpu.memory_space<vmem>>, %arg13: memref<6x8x128xf32, #tpu.memory_space<vmem>>, %arg14: memref<6x8x128xf32, #tpu.memory_space<vmem>>) attributes {dimension_semantics = [#tpu.dimension_semantics<parallel>], iteration_bounds = array<i64: 1>, scalar_prefetch = 0 : i64, scratch_operands = 0 : i64, tpu.core_type = #tpu.core_type<tc>, window_params = [{transform_indices = @transform_0, window_bounds = array<i64: 6, 8, 128>}, {transform_indices = @transform_1, window_bounds = array<i64: 8, 128>}, {pipeline_mode = #tpu.pipeline_mode<synchronous>, transform_indices = @transform_2, window_bounds = array<i64: 128, 128>}, {pipeline_mode = #tpu.pipeline_mode<synchronous>, transform_indices = @transform_3, window_bounds = array<i64: 1, 128>}, {pipeline_mode = #tpu.pipeline_mode<synchronous>, transform_indices = @transform_4, window_bounds = array<i64: 128, 512>}, {pipeline_mode = #tpu.pipeline_mode<synchronous>, transform_indices = @transform_5, window_bounds = array<i64: 128, 512>}, {pipeline_mode = #tpu.pipeline_mode<synchronous>, transform_indices = @transform_6, window_bounds = array<i64: 1, 512>}, {pipeline_mode = #tpu.pipeline_mode<synchronous>, transform_indices = @transform_7, window_bounds = array<i64: 128, 128>}, {pipeline_mode = #tpu.pipeline_mode<synchronous>, transform_indices = @transform_8, window_bounds = array<i64: 128, 128>}, {pipeline_mode = #tpu.pipeline_mode<synchronous>, transform_indices = @transform_9, window_bounds = array<i64: 1, 128>}, {pipeline_mode = #tpu.pipeline_mode<synchronous>, transform_indices = @transform_10, window_bounds = array<i64: 128, 128>}, {pipeline_mode = #tpu.pipeline_mode<synchronous>, transform_indices = @transform_11, window_bounds = array<i64: 1, 128>}, {transform_indices = @transform_12, window_bounds = array<i64: 6, 8, 128>}, {transform_indices = @transform_13, window_bounds = array<i64: 6, 8, 128>}]} {
    %c0 = arith.constant 0 : index
    %c0_0 = arith.constant 0 : index
    %c0_1 = arith.constant 0 : index
    %0 = vector.load %arg1[%c0, %c0_0, %c0_1] : memref<6x8x128xf32, #tpu.memory_space<vmem>>, vector<6x8x128xf32>
    %1 = vector.shape_cast %0 : vector<6x8x128xf32> to vector<48x128xf32>
    %2 = arith.truncf %1 : vector<48x128xf32> to vector<48x128xbf16>
    %c0_2 = arith.constant 0 : index
    %c0_3 = arith.constant 0 : index
    %3 = vector.load %arg2[%c0_2, %c0_3] : memref<8x128xf32, #tpu.memory_space<vmem>>, vector<8x128xf32>
    %4 = arith.truncf %3 : vector<8x128xf32> to vector<8x128xbf16>
    %c0_4 = arith.constant 0 : index
    %c0_5 = arith.constant 0 : index
    %5 = vector.load %arg3[%c0_4, %c0_5] : memref<128x128xbf16, #tpu.memory_space<vmem>>, vector<128x128xbf16>
    %cst = arith.constant dense<0.000000e+00> : vector<8x128xf32>
    %6 = tpu.matmul %4, %5, %cst {dimension_numbers = #tpu.dot_dimension_numbers<[1], [0], [0], [1], [0, 0, 1, 1], [], []>} : vector<8x128xbf16>, vector<128x128xbf16>, vector<8x128xf32> -> vector<8x128xf32>
    %c0_6 = arith.constant 0 : index
    %c0_7 = arith.constant 0 : index
    %7 = vector.load %arg4[%c0_6, %c0_7] : memref<1x128xf32, #tpu.memory_space<vmem>>, vector<1x128xf32>
    %8 = vector.broadcast %7 : vector<1x128xf32> to vector<8x128xf32>
    %9 = arith.addf %6, %8 : vector<8x128xf32>
    %c0_8 = arith.constant 0 : index
    %c0_9 = arith.constant 0 : index
    %10 = vector.load %arg5[%c0_8, %c0_9] : memref<128x512xbf16, #tpu.memory_space<vmem>>, vector<128x512xbf16>
    %cst_10 = arith.constant dense<0.000000e+00> : vector<48x512xf32>
    %11 = tpu.matmul %2, %10, %cst_10 {dimension_numbers = #tpu.dot_dimension_numbers<[1], [0], [0], [1], [0, 0, 1, 1], [], []>} : vector<48x128xbf16>, vector<128x512xbf16>, vector<48x512xf32> -> vector<48x512xf32>
    %c0_11 = arith.constant 0 : index
    %c0_12 = arith.constant 0 : index
    %12 = vector.load %arg7[%c0_11, %c0_12] : memref<1x512xf32, #tpu.memory_space<vmem>>, vector<1x512xf32>
    %13 = vector.broadcast %12 : vector<1x512xf32> to vector<48x512xf32>
    %14 = arith.addf %11, %13 : vector<48x512xf32>
    %c0_13 = arith.constant 0 : index
    %c0_14 = arith.constant 0 : index
    %15 = vector.load %arg6[%c0_13, %c0_14] : memref<128x512xbf16, #tpu.memory_space<vmem>>, vector<128x512xbf16>
    %cst_15 = arith.constant 0.000000e+00 : f32
    %16 = vector.broadcast %cst_15 : f32 to vector<8x128xf32>
    %cst_16 = arith.constant 0.000000e+00 : f32
    %17 = vector.broadcast %cst_16 : f32 to vector<8x128xf32>
    %18 = vector.extract_strided_slice %14 {offsets = [0, 0], sizes = [8, 512], strides = [1, 1]} : vector<48x512xf32> to vector<8x512xf32>
    %19 = arith.truncf %16 : vector<8x128xf32> to vector<8x128xbf16>
    %cst_17 = arith.constant dense<0.000000e+00> : vector<8x512xf32>
    %20 = tpu.matmul %19, %15, %cst_17 {dimension_numbers = #tpu.dot_dimension_numbers<[1], [0], [0], [1], [0, 0, 1, 1], [], []>} : vector<8x128xbf16>, vector<128x512xbf16>, vector<8x512xf32> -> vector<8x512xf32>
    %21 = arith.addf %18, %20 : vector<8x512xf32>
    %22 = vector.extract_strided_slice %21 {offsets = [0, 0], sizes = [8, 384], strides = [1, 1]} : vector<8x512xf32> to vector<8x384xf32>
    %23 = arith.negf %22 : vector<8x384xf32>
    %24 = math.exp %23 : vector<8x384xf32>
    %cst_18 = arith.constant 1.000000e+00 : f32
    %25 = vector.broadcast %cst_18 : f32 to vector<8x384xf32>
    %26 = arith.addf %25, %24 : vector<8x384xf32>
    %27 = arith.divf %25, %26 : vector<8x384xf32>
    %28 = vector.extract_strided_slice %27 {offsets = [0, 0], sizes = [8, 128], strides = [1, 1]} : vector<8x384xf32> to vector<8x128xf32>
    %29 = vector.extract_strided_slice %27 {offsets = [0, 128], sizes = [8, 128], strides = [1, 1]} : vector<8x384xf32> to vector<8x128xf32>
    %30 = vector.extract_strided_slice %27 {offsets = [0, 256], sizes = [8, 128], strides = [1, 1]} : vector<8x384xf32> to vector<8x128xf32>
    %31 = vector.extract_strided_slice %21 {offsets = [0, 384], sizes = [8, 128], strides = [1, 1]} : vector<8x512xf32> to vector<8x128xf32>
    %32 = math.tanh %31 : vector<8x128xf32>
    %33 = arith.mulf %29, %17 : vector<8x128xf32>
    %34 = arith.mulf %28, %32 : vector<8x128xf32>
    %35 = arith.addf %33, %34 : vector<8x128xf32>
    %36 = math.tanh %35 : vector<8x128xf32>
    %37 = arith.mulf %30, %36 : vector<8x128xf32>
    %38 = vector.extract_strided_slice %14 {offsets = [8, 0], sizes = [8, 512], strides = [1, 1]} : vector<48x512xf32> to vector<8x512xf32>
    %39 = arith.truncf %37 : vector<8x128xf32> to vector<8x128xbf16>
    %cst_19 = arith.constant dense<0.000000e+00> : vector<8x512xf32>
    %40 = tpu.matmul %39, %15, %cst_19 {dimension_numbers = #tpu.dot_dimension_numbers<[1], [0], [0], [1], [0, 0, 1, 1], [], []>} : vector<8x128xbf16>, vector<128x512xbf16>, vector<8x512xf32> -> vector<8x512xf32>
    %41 = arith.addf %38, %40 : vector<8x512xf32>
    %42 = vector.extract_strided_slice %41 {offsets = [0, 0], sizes = [8, 384], strides = [1, 1]} : vector<8x512xf32> to vector<8x384xf32>
    %43 = arith.negf %42 : vector<8x384xf32>
    %44 = math.exp %43 : vector<8x384xf32>
    %cst_20 = arith.constant 1.000000e+00 : f32
    %45 = vector.broadcast %cst_20 : f32 to vector<8x384xf32>
    %46 = arith.addf %45, %44 : vector<8x384xf32>
    %47 = arith.divf %45, %46 : vector<8x384xf32>
    %48 = vector.extract_strided_slice %47 {offsets = [0, 0], sizes = [8, 128], strides = [1, 1]} : vector<8x384xf32> to vector<8x128xf32>
    %49 = vector.extract_strided_slice %47 {offsets = [0, 128], sizes = [8, 128], strides = [1, 1]} : vector<8x384xf32> to vector<8x128xf32>
    %50 = vector.extract_strided_slice %47 {offsets = [0, 256], sizes = [8, 128], strides = [1, 1]} : vector<8x384xf32> to vector<8x128xf32>
    %51 = vector.extract_strided_slice %41 {offsets = [0, 384], sizes = [8, 128], strides = [1, 1]} : vector<8x512xf32> to vector<8x128xf32>
    %52 = math.tanh %51 : vector<8x128xf32>
    %53 = arith.mulf %49, %35 : vector<8x128xf32>
    %54 = arith.mulf %48, %52 : vector<8x128xf32>
    %55 = arith.addf %53, %54 : vector<8x128xf32>
    %56 = math.tanh %55 : vector<8x128xf32>
    %57 = arith.mulf %50, %56 : vector<8x128xf32>
    %58 = vector.extract_strided_slice %14 {offsets = [16, 0], sizes = [8, 512], strides = [1, 1]} : vector<48x512xf32> to vector<8x512xf32>
    %59 = arith.truncf %57 : vector<8x128xf32> to vector<8x128xbf16>
    %cst_21 = arith.constant dense<0.000000e+00> : vector<8x512xf32>
    %60 = tpu.matmul %59, %15, %cst_21 {dimension_numbers = #tpu.dot_dimension_numbers<[1], [0], [0], [1], [0, 0, 1, 1], [], []>} : vector<8x128xbf16>, vector<128x512xbf16>, vector<8x512xf32> -> vector<8x512xf32>
    %61 = arith.addf %58, %60 : vector<8x512xf32>
    %62 = vector.extract_strided_slice %61 {offsets = [0, 0], sizes = [8, 384], strides = [1, 1]} : vector<8x512xf32> to vector<8x384xf32>
    %63 = arith.negf %62 : vector<8x384xf32>
    %64 = math.exp %63 : vector<8x384xf32>
    %cst_22 = arith.constant 1.000000e+00 : f32
    %65 = vector.broadcast %cst_22 : f32 to vector<8x384xf32>
    %66 = arith.addf %65, %64 : vector<8x384xf32>
    %67 = arith.divf %65, %66 : vector<8x384xf32>
    %68 = vector.extract_strided_slice %67 {offsets = [0, 0], sizes = [8, 128], strides = [1, 1]} : vector<8x384xf32> to vector<8x128xf32>
    %69 = vector.extract_strided_slice %67 {offsets = [0, 128], sizes = [8, 128], strides = [1, 1]} : vector<8x384xf32> to vector<8x128xf32>
    %70 = vector.extract_strided_slice %67 {offsets = [0, 256], sizes = [8, 128], strides = [1, 1]} : vector<8x384xf32> to vector<8x128xf32>
    %71 = vector.extract_strided_slice %61 {offsets = [0, 384], sizes = [8, 128], strides = [1, 1]} : vector<8x512xf32> to vector<8x128xf32>
    %72 = math.tanh %71 : vector<8x128xf32>
    %73 = arith.mulf %69, %55 : vector<8x128xf32>
    %74 = arith.mulf %68, %72 : vector<8x128xf32>
    %75 = arith.addf %73, %74 : vector<8x128xf32>
    %76 = math.tanh %75 : vector<8x128xf32>
    %77 = arith.mulf %70, %76 : vector<8x128xf32>
    %78 = vector.extract_strided_slice %14 {offsets = [24, 0], sizes = [8, 512], strides = [1, 1]} : vector<48x512xf32> to vector<8x512xf32>
    %79 = arith.truncf %77 : vector<8x128xf32> to vector<8x128xbf16>
    %cst_23 = arith.constant dense<0.000000e+00> : vector<8x512xf32>
    %80 = tpu.matmul %79, %15, %cst_23 {dimension_numbers = #tpu.dot_dimension_numbers<[1], [0], [0], [1], [0, 0, 1, 1], [], []>} : vector<8x128xbf16>, vector<128x512xbf16>, vector<8x512xf32> -> vector<8x512xf32>
    %81 = arith.addf %78, %80 : vector<8x512xf32>
    %82 = vector.extract_strided_slice %81 {offsets = [0, 0], sizes = [8, 384], strides = [1, 1]} : vector<8x512xf32> to vector<8x384xf32>
    %83 = arith.negf %82 : vector<8x384xf32>
    %84 = math.exp %83 : vector<8x384xf32>
    %cst_24 = arith.constant 1.000000e+00 : f32
    %85 = vector.broadcast %cst_24 : f32 to vector<8x384xf32>
    %86 = arith.addf %85, %84 : vector<8x384xf32>
    %87 = arith.divf %85, %86 : vector<8x384xf32>
    %88 = vector.extract_strided_slice %87 {offsets = [0, 0], sizes = [8, 128], strides = [1, 1]} : vector<8x384xf32> to vector<8x128xf32>
    %89 = vector.extract_strided_slice %87 {offsets = [0, 128], sizes = [8, 128], strides = [1, 1]} : vector<8x384xf32> to vector<8x128xf32>
    %90 = vector.extract_strided_slice %87 {offsets = [0, 256], sizes = [8, 128], strides = [1, 1]} : vector<8x384xf32> to vector<8x128xf32>
    %91 = vector.extract_strided_slice %81 {offsets = [0, 384], sizes = [8, 128], strides = [1, 1]} : vector<8x512xf32> to vector<8x128xf32>
    %92 = math.tanh %91 : vector<8x128xf32>
    %93 = arith.mulf %89, %75 : vector<8x128xf32>
    %94 = arith.mulf %88, %92 : vector<8x128xf32>
    %95 = arith.addf %93, %94 : vector<8x128xf32>
    %96 = math.tanh %95 : vector<8x128xf32>
    %97 = arith.mulf %90, %96 : vector<8x128xf32>
    %98 = vector.extract_strided_slice %14 {offsets = [32, 0], sizes = [8, 512], strides = [1, 1]} : vector<48x512xf32> to vector<8x512xf32>
    %99 = arith.truncf %97 : vector<8x128xf32> to vector<8x128xbf16>
    %cst_25 = arith.constant dense<0.000000e+00> : vector<8x512xf32>
    %100 = tpu.matmul %99, %15, %cst_25 {dimension_numbers = #tpu.dot_dimension_numbers<[1], [0], [0], [1], [0, 0, 1, 1], [], []>} : vector<8x128xbf16>, vector<128x512xbf16>, vector<8x512xf32> -> vector<8x512xf32>
    %101 = arith.addf %98, %100 : vector<8x512xf32>
    %102 = vector.extract_strided_slice %101 {offsets = [0, 0], sizes = [8, 384], strides = [1, 1]} : vector<8x512xf32> to vector<8x384xf32>
    %103 = arith.negf %102 : vector<8x384xf32>
    %104 = math.exp %103 : vector<8x384xf32>
    %cst_26 = arith.constant 1.000000e+00 : f32
    %105 = vector.broadcast %cst_26 : f32 to vector<8x384xf32>
    %106 = arith.addf %105, %104 : vector<8x384xf32>
    %107 = arith.divf %105, %106 : vector<8x384xf32>
    %108 = vector.extract_strided_slice %107 {offsets = [0, 0], sizes = [8, 128], strides = [1, 1]} : vector<8x384xf32> to vector<8x128xf32>
    %109 = vector.extract_strided_slice %107 {offsets = [0, 128], sizes = [8, 128], strides = [1, 1]} : vector<8x384xf32> to vector<8x128xf32>
    %110 = vector.extract_strided_slice %107 {offsets = [0, 256], sizes = [8, 128], strides = [1, 1]} : vector<8x384xf32> to vector<8x128xf32>
    %111 = vector.extract_strided_slice %101 {offsets = [0, 384], sizes = [8, 128], strides = [1, 1]} : vector<8x512xf32> to vector<8x128xf32>
    %112 = math.tanh %111 : vector<8x128xf32>
    %113 = arith.mulf %109, %95 : vector<8x128xf32>
    %114 = arith.mulf %108, %112 : vector<8x128xf32>
    %115 = arith.addf %113, %114 : vector<8x128xf32>
    %116 = math.tanh %115 : vector<8x128xf32>
    %117 = arith.mulf %110, %116 : vector<8x128xf32>
    %118 = vector.extract_strided_slice %14 {offsets = [40, 0], sizes = [8, 512], strides = [1, 1]} : vector<48x512xf32> to vector<8x512xf32>
    %119 = arith.truncf %117 : vector<8x128xf32> to vector<8x128xbf16>
    %cst_27 = arith.constant dense<0.000000e+00> : vector<8x512xf32>
    %120 = tpu.matmul %119, %15, %cst_27 {dimension_numbers = #tpu.dot_dimension_numbers<[1], [0], [0], [1], [0, 0, 1, 1], [], []>} : vector<8x128xbf16>, vector<128x512xbf16>, vector<8x512xf32> -> vector<8x512xf32>
    %121 = arith.addf %118, %120 : vector<8x512xf32>
    %122 = vector.extract_strided_slice %121 {offsets = [0, 0], sizes = [8, 384], strides = [1, 1]} : vector<8x512xf32> to vector<8x384xf32>
    %123 = arith.negf %122 : vector<8x384xf32>
    %124 = math.exp %123 : vector<8x384xf32>
    %cst_28 = arith.constant 1.000000e+00 : f32
    %125 = vector.broadcast %cst_28 : f32 to vector<8x384xf32>
    %126 = arith.addf %125, %124 : vector<8x384xf32>
    %127 = arith.divf %125, %126 : vector<8x384xf32>
    %128 = vector.extract_strided_slice %127 {offsets = [0, 0], sizes = [8, 128], strides = [1, 1]} : vector<8x384xf32> to vector<8x128xf32>
    %129 = vector.extract_strided_slice %127 {offsets = [0, 128], sizes = [8, 128], strides = [1, 1]} : vector<8x384xf32> to vector<8x128xf32>
    %130 = vector.extract_strided_slice %127 {offsets = [0, 256], sizes = [8, 128], strides = [1, 1]} : vector<8x384xf32> to vector<8x128xf32>
    %131 = vector.extract_strided_slice %121 {offsets = [0, 384], sizes = [8, 128], strides = [1, 1]} : vector<8x512xf32> to vector<8x128xf32>
    %132 = math.tanh %131 : vector<8x128xf32>
    %133 = arith.mulf %129, %115 : vector<8x128xf32>
    %134 = arith.mulf %128, %132 : vector<8x128xf32>
    %135 = arith.addf %133, %134 : vector<8x128xf32>
    %136 = math.tanh %135 : vector<8x128xf32>
    %137 = arith.mulf %130, %136 : vector<8x128xf32>
    %138 = tpu.concatenate %37, %57, %77, %97, %117, %137 in 0 : vector<8x128xf32>, vector<8x128xf32>, vector<8x128xf32>, vector<8x128xf32>, vector<8x128xf32>, vector<8x128xf32> -> vector<48x128xf32>
    %139 = arith.truncf %138 : vector<48x128xf32> to vector<48x128xbf16>
    %140 = arith.truncf %9 : vector<8x128xf32> to vector<8x128xbf16>
    %c0_29 = arith.constant 0 : index
    %c0_30 = arith.constant 0 : index
    %141 = vector.load %arg9[%c0_29, %c0_30] : memref<128x128xbf16, #tpu.memory_space<vmem>>, vector<128x128xbf16>
    %cst_31 = arith.constant dense<0.000000e+00> : vector<8x128xf32>
    %142 = tpu.matmul %140, %141, %cst_31 {dimension_numbers = #tpu.dot_dimension_numbers<[1], [0], [0], [1], [0, 0, 1, 1], [], []>} : vector<8x128xbf16>, vector<128x128xbf16>, vector<8x128xf32> -> vector<8x128xf32>
    %c0_32 = arith.constant 0 : index
    %c0_33 = arith.constant 0 : index
    %143 = vector.load %arg10[%c0_32, %c0_33] : memref<1x128xf32, #tpu.memory_space<vmem>>, vector<1x128xf32>
    %144 = vector.broadcast %143 : vector<1x128xf32> to vector<8x128xf32>
    %145 = arith.addf %142, %144 : vector<8x128xf32>
    %c0_34 = arith.constant 0 : index
    %c0_35 = arith.constant 0 : index
    %146 = vector.load %arg8[%c0_34, %c0_35] : memref<128x128xbf16, #tpu.memory_space<vmem>>, vector<128x128xbf16>
    %cst_36 = arith.constant dense<0.000000e+00> : vector<48x128xf32>
    %147 = tpu.matmul %139, %146, %cst_36 {dimension_numbers = #tpu.dot_dimension_numbers<[1], [0], [0], [1], [0, 0, 1, 1], [], []>} : vector<48x128xbf16>, vector<128x128xbf16>, vector<48x128xf32> -> vector<48x128xf32>
    %148 = vector.shape_cast %147 : vector<48x128xf32> to vector<6x8x128xf32>
    %149 = vector.shape_cast %145 : vector<8x128xf32> to vector<1x8x128xf32>
    %150 = vector.broadcast %149 : vector<1x8x128xf32> to vector<6x8x128xf32>
    %151 = arith.addf %148, %150 : vector<6x8x128xf32>
    %cst_37 = arith.constant 0.000000e+00 : f32
    %152 = vector.broadcast %cst_37 : f32 to vector<6x8x128xf32>
    %153 = arith.maximumf %151, %152 : vector<6x8x128xf32>
    %c0_38 = arith.constant 0 : index
    %c0_39 = arith.constant 0 : index
    %c0_40 = arith.constant 0 : index
    %154 = vector.load %arg14[%c0_38, %c0_39, %c0_40] : memref<6x8x128xf32, #tpu.memory_space<vmem>>, vector<6x8x128xf32>
    tpu.vector_store %arg14[%c0_38, %c0_39, %c0_40], %153 {strides = array<i32>} : memref<6x8x128xf32, #tpu.memory_space<vmem>>, vector<6x8x128xf32>,
    %155 = vector.shape_cast %153 : vector<6x8x128xf32> to vector<48x128xf32>
    %156 = arith.truncf %155 : vector<48x128xf32> to vector<48x128xbf16>
    %c0_41 = arith.constant 0 : index
    %c0_42 = arith.constant 0 : index
    %157 = vector.load %arg11[%c0_41, %c0_42] : memref<128x128xbf16, #tpu.memory_space<vmem>>, vector<128x128xbf16>
    %cst_43 = arith.constant dense<0.000000e+00> : vector<48x128xf32>
    %158 = tpu.matmul %156, %157, %cst_43 {dimension_numbers = #tpu.dot_dimension_numbers<[1], [0], [0], [1], [0, 0, 1, 1], [], []>} : vector<48x128xbf16>, vector<128x128xbf16>, vector<48x128xf32> -> vector<48x128xf32>
    %c0_44 = arith.constant 0 : index
    %c0_45 = arith.constant 0 : index
    %159 = vector.load %arg12[%c0_44, %c0_45] : memref<1x128xf32, #tpu.memory_space<vmem>>, vector<1x128xf32>
    %160 = vector.broadcast %159 : vector<1x128xf32> to vector<48x128xf32>
    %161 = arith.addf %158, %160 : vector<48x128xf32>
    %162 = vector.shape_cast %161 : vector<48x128xf32> to vector<6x8x128xf32>
    %c0_46 = arith.constant 0 : index
    %c0_47 = arith.constant 0 : index
    %c0_48 = arith.constant 0 : index
    %163 = vector.load %arg13[%c0_46, %c0_47, %c0_48] : memref<6x8x128xf32, #tpu.memory_space<vmem>>, vector<6x8x128xf32>
    tpu.vector_store %arg13[%c0_46, %c0_47, %c0_48], %162 {strides = array<i32>} : memref<6x8x128xf32, #tpu.memory_space<vmem>>, vector<6x8x128xf32>,
    return
  }
  func.func @transform_0(%arg0: i32) -> (i32, i32, i32) {
    %c0_i32 = arith.constant 0 : i32
    %c0_i32_0 = arith.constant 0 : i32
    %c0_i32_1 = arith.constant 0 : i32
    return %c0_i32, %arg0, %c0_i32_0 : i32, i32, i32
  }
  func.func @transform_1(%arg0: i32) -> (i32, i32) {
    %c0_i32 = arith.constant 0 : i32
    %c0_i32_0 = arith.constant 0 : i32
    return %arg0, %c0_i32 : i32, i32
  }
  func.func @transform_2(%arg0: i32) -> (i32, i32) {
    %c0_i32 = arith.constant 0 : i32
    %c0_i32_0 = arith.constant 0 : i32
    %c0_i32_1 = arith.constant 0 : i32
    return %c0_i32, %c0_i32_0 : i32, i32
  }
  func.func @transform_3(%arg0: i32) -> (i32, i32) {
    %c0_i32 = arith.constant 0 : i32
    %c0_i32_0 = arith.constant 0 : i32
    %c0_i32_1 = arith.constant 0 : i32
    return %c0_i32, %c0_i32_0 : i32, i32
  }
  func.func @transform_4(%arg0: i32) -> (i32, i32) {
    %c0_i32 = arith.constant 0 : i32
    %c0_i32_0 = arith.constant 0 : i32
    %c0_i32_1 = arith.constant 0 : i32
    return %c0_i32, %c0_i32_0 : i32, i32
  }
  func.func @transform_5(%arg0: i32) -> (i32, i32) {
    %c0_i32 = arith.constant 0 : i32
    %c0_i32_0 = arith.constant 0 : i32
    %c0_i32_1 = arith.constant 0 : i32
    return %c0_i32, %c0_i32_0 : i32, i32
  }
  func.func @transform_6(%arg0: i32) -> (i32, i32) {
    %c0_i32 = arith.constant 0 : i32
    %c0_i32_0 = arith.constant 0 : i32
    %c0_i32_1 = arith.constant 0 : i32
    return %c0_i32, %c0_i32_0 : i32, i32
  }
  func.func @transform_7(%arg0: i32) -> (i32, i32) {
    %c0_i32 = arith.constant 0 : i32
    %c0_i32_0 = arith.constant 0 : i32
    %c0_i32_1 = arith.constant 0 : i32
    return %c0_i32, %c0_i32_0 : i32, i32
  }
  func.func @transform_8(%arg0: i32) -> (i32, i32) {
    %c0_i32 = arith.constant 0 : i32
    %c0_i32_0 = arith.constant 0 : i32
    %c0_i32_1 = arith.constant 0 : i32
    return %c0_i32, %c0_i32_0 : i32, i32
  }
  func.func @transform_9(%arg0: i32) -> (i32, i32) {
    %c0_i32 = arith.constant 0 : i32
    %c0_i32_0 = arith.constant 0 : i32
    %c0_i32_1 = arith.constant 0 : i32
    return %c0_i32, %c0_i32_0 : i32, i32
  }
  func.func @transform_10(%arg0: i32) -> (i32, i32) {
    %c0_i32 = arith.constant 0 : i32
    %c0_i32_0 = arith.constant 0 : i32
    %c0_i32_1 = arith.constant 0 : i32
    return %c0_i32, %c0_i32_0 : i32, i32
  }
  func.func @transform_11(%arg0: i32) -> (i32, i32) {
    %c0_i32 = arith.constant 0 : i32
    %c0_i32_0 = arith.constant 0 : i32
    %c0_i32_1 = arith.constant 0 : i32
    return %c0_i32, %c0_i32_0 : i32, i32
  }
  func.func @transform_12(%arg0: i32) -> (i32, i32, i32) {
    %c0_i32 = arith.constant 0 : i32
    %c0_i32_0 = arith.constant 0 : i32
    %c0_i32_1 = arith.constant 0 : i32
    return %c0_i32, %arg0, %c0_i32_0 : i32, i32, i32
  }
  func.func @transform_13(%arg0: i32) -> (i32, i32, i32) {
    %c0_i32 = arith.constant 0 : i32
    %c0_i32_0 = arith.constant 0 : i32
    %c0_i32_1 = arith.constant 0 : i32
    return %c0_i32, %arg0, %c0_i32_0 : i32, i32, i32
  }
}

</mosaic_0001>

<bundles_post_ra>
// kernel: tpu_custom_call.1
= control target key start
LH: loop header
LB: loop body
LE: loop exit
PB: predicated region body
PF: predicated region fallthrough
CT: control target
= control target key end

     0   :  { %19 = vsyncpa [#allocation3], 0  ;;  %s3220_s0 = inlined_call_operand.hbm [shape: f32[6,8,128], index: 0, kind: input, shape index: {}]   ;;  %s3221_s1 = inlined_call_operand.hbm [shape: f32[8,128], index: 1, kind: input, shape index: {}]   ;;  %s3222_s2 = inlined_call_operand.hbm [shape: bf16[128,128], index: 2, kind: input, shape index: {}]   ;;  %s3223_s3 = inlined_call_operand.vmem [shape: f32[1,128], index: 3, kind: input, shape index: {}]   ;;  %s3224_s4 = inlined_call_operand.hbm [shape: bf16[128,512], index: 4, kind: input, shape index: {}]   ;;  %s3225_s5 = inlined_call_operand.hbm [shape: bf16[128,512], index: 5, kind: input, shape index: {}]   ;;  %s3226_s6 = inlined_call_operand.vmem [shape: f32[1,512], index: 6, kind: input, shape index: {}]   ;;  %s3227_s7 = inlined_call_operand.hbm [shape: bf16[128,128], index: 7, kind: input, shape index: {}]   ;;  %s3228_s8 = inlined_call_operand.hbm [shape: bf16[128,128], index: 8, kind: input, shape index: {}]   ;;  %s3229_s9 = inlined_call_operand.vmem [shape: f32[1,128], index: 9, kind: input, shape index: {}]   ;;  %s3230_s10 = inlined_call_operand.hbm [shape: bf16[128,128], index: 10, kind: input, shape index: {}]   ;;  %s3231_s11 = inlined_call_operand.vmem [shape: f32[1,128], index: 11, kind: input, shape index: {}]   ;;  %s3232_s12 = inlined_call_operand.hbm [shape: f32[6,8,128], index: 12, kind: output, shape index: {0}]   ;;  %s3233_s13 = inlined_call_operand.hbm [shape: f32[6,8,128], index: 13, kind: output, shape index: {1}]  }
   0x1   :  { %20 = vsyncpa [#allocation6], 0 }
   0x2   :  { %21 = vsyncpa [#allocation9], 0 }
   0x3   :  { %22 = vsyncpa [#allocation12], 0 }
   0x4   :  { %23 = vsyncpa [#allocation15], 0 }
   0x5   :  { %24 = vsyncpa [#allocation4], 0 }
   0x6   :  { %25 = vsyncpa [#allocation18], 0  ;;  %s2619_s25 = smov [#allocation5]   ;;  %s2620_s27 = smov [#allocation8]  }
   0x7   :  { %s44_s26 = sshll.u32 %s2619_s25, 4  ;;  %s67_s28 = sshll.u32 %s2620_s27, 4  ;;  %s45_s26 = int_to_ptr.vmem [resolvable:$true] %s44_s26  ;;  %s68_s28 = int_to_ptr.vmem [resolvable:$true] %s67_s28 }
   0x8   :  { %s2413_s29 = scalar_lea.vmem %s45_s26, 128  ;;  %p2418_p1 = scmp.lt.s32.totalorder %s45_s26, %s45_s26 }
   0x9   :  { %p2414_p0 = scmp.ne.s32.totalorder %s45_s26, %s2413_s29  ;;  %p2419_p2 = scmp.lt.s32.totalorder %s2413_s29, %s2413_s29 }
   0xb   :  { %p2420_p3 = por %p2419_p2, %p2418_p1 }
   0xd   :  { %p2421_p4 = pnand %p2420_p3, %p2414_p0 }
   0xf   :  { %2424 = shalt.err (!%p2421_p4)
}
  0x10   :  { %47 = dma.hbm_to_vmem [thread:$0]  %s3221_s1, 128, %s45_s26, [#allocation6]  }
  0x11   :  { %s2433_s15 = scalar_lea.vmem %s68_s28, 4096  ;;  %p2438_p6 = scmp.lt.s32.totalorder %s68_s28, %s68_s28 }
  0x12   :  { %p2434_p5 = scmp.ne.s32.totalorder %s68_s28, %s2433_s15  ;;  %p2439_p7 = scmp.lt.s32.totalorder %s2433_s15, %s2433_s15 }
  0x14   :  { %p2440_p8 = por %p2439_p7, %p2438_p6 }
  0x16   :  { %p2441_p9 = pnand %p2440_p8, %p2434_p5 }
  0x18   :  { %2444 = shalt.err (!%p2441_p9)
}
  0x19   :  { %s2621_s16 = smov 256   ;;  %s2622_s17 = smov 16  }
  0x1a   :  { %73 = dma.hbm_to_vmem [thread:$0]  %s3224_s4, 4096, %s68_s28, [#allocation9], %s2621_s16, %s2621_s16, %s2622_s17  }
  0x1b   :  { %s2623_s20 = smov [#allocation11]   ;;  %s2624_s22 = smov [#allocation2]  }
  0x1c   :  { %s93_s21 = sshll.u32 %s2623_s20, 4  ;;  %s31_s1 = sshll.u32 %s2624_s22, 4  ;;  %s94_s21 = int_to_ptr.vmem [resolvable:$true] %s93_s21  ;;  %s32_s1 = int_to_ptr.vmem [resolvable:$true] %s31_s1 }
  0x1d   :  { %s2453_s23 = scalar_lea.vmem %s94_s21, 1024  ;;  %p2458_p11 = scmp.lt.s32.totalorder %s94_s21, %s94_s21 }
  0x1e   :  { %p2454_p10 = scmp.ne.s32.totalorder %s94_s21, %s2453_s23  ;;  %p2459_p12 = scmp.lt.s32.totalorder %s2453_s23, %s2453_s23 }
  0x20   :  { %p2460_p13 = por %p2459_p12, %p2458_p11 }
  0x22   :  { %p2461_p0 = pnand %p2460_p13, %p2454_p10 }
  0x24   :  { %2464 = shalt.err (!%p2461_p0)
}
  0x25   :  { %s2625_s24 = smov 64   ;;  %s2626_s25 = smov 4  }
  0x26   :  { %99 = dma.hbm_to_vmem [thread:$0]  %s3227_s7, 1024, %s94_s21, [#allocation12], %s2625_s24, %s2625_s24, %s2626_s25  }
  0x27   :  { %s2473_s27 = scalar_lea.vmem %s32_s1, 768  ;;  %p2478_p2 = scmp.lt.s32.totalorder %s32_s1, %s32_s1 }
  0x28   :  { %p2474_p1 = scmp.ne.s32.totalorder %s32_s1, %s2473_s27  ;;  %p2479_p3 = scmp.lt.s32.totalorder %s2473_s27, %s2473_s27 }
  0x2a   :  { %p2480_p4 = por %p2479_p3, %p2478_p2 }
  0x2c   :  { %p2481_p5 = pnand %p2480_p4, %p2474_p1 }
  0x2e   :  { %2484 = shalt.err (!%p2481_p5)
}
  0x2f   :  { %s2627_s28 = smov 128   ;;  %s2628_s29 = smov 8  }
  0x30   :  { %37 = dma.hbm_to_vmem [thread:$0]  %s3220_s0, 768, %s32_s1, [#allocation3], %s2627_s28, %s2627_s28, %s2628_s29  }
  0x31   :  { %s2629_s15 = smov [#allocation7]   ;;  %s2630_s19 = smov [#allocation10]  }
  0x32   :  { %s53_s18 = sshll.u32 %s2629_s15, 4  ;;  %s79_s7 = sshll.u32 %s2630_s19, 4  ;;  %s54_s18 = int_to_ptr.vmem [resolvable:$true] %s53_s18  ;;  %s80_s7 = int_to_ptr.vmem [resolvable:$true] %s79_s7 }
  0x33   :  { %s2493_s20 = scalar_lea.vmem %s54_s18, 1024  ;;  %p2498_p7 = scmp.lt.s32.totalorder %s54_s18, %s54_s18 }
  0x34   :  { %p2494_p6 = scmp.ne.s32.totalorder %s54_s18, %s2493_s20  ;;  %p2499_p8 = scmp.lt.s32.totalorder %s2493_s20, %s2493_s20 }
  0x36   :  { %p2500_p9 = por %p2499_p8, %p2498_p7 }
  0x38   :  { %p2501_p10 = pnand %p2500_p9, %p2494_p6 }
  0x3a   :  { %2504 = shalt.err (!%p2501_p10)
}
  0x3b   :  { %59 = dma.hbm_to_vmem [thread:$0]  %s3222_s2, 1024, %s54_s18, [#allocation6], %s2625_s24, %s2625_s24, %s2626_s25  }
  0x3c   :  { %s2513_s0 = scalar_lea.vmem %s80_s7, 4096  ;;  %p2518_p12 = scmp.lt.s32.totalorder %s80_s7, %s80_s7 }
  0x3d   :  { %p2514_p11 = scmp.ne.s32.totalorder %s80_s7, %s2513_s0  ;;  %p2519_p13 = scmp.lt.s32.totalorder %s2513_s0, %s2513_s0 }
  0x3f   :  { %p2520_p0 = por %p2519_p13, %p2518_p12 }
  0x41   :  { %p2521_p1 = pnand %p2520_p0, %p2514_p11 }
  0x43   :  { %2524 = shalt.err (!%p2521_p1)
}
  0x44   :  { %85 = dma.hbm_to_vmem [thread:$0]  %s3225_s5, 4096, %s80_s7, [#allocation9], %s2621_s16, %s2621_s16, %s2622_s17  }
  0x45   :  { %s2631_s26 = smov [#allocation13]   ;;  %s2632_s27 = smov [#allocation14]  }
  0x46   :  { %s105_s4 = sshll.u32 %s2631_s26, 4  ;;  %s119_s30 = sshll.u32 %s2632_s27, 4  ;;  %s106_s4 = int_to_ptr.vmem [resolvable:$true] %s105_s4  ;;  %s120_s30 = int_to_ptr.vmem [resolvable:$true] %s119_s30 }
  0x47   :  { %s2533_s2 = scalar_lea.vmem %s106_s4, 1024  ;;  %p2538_p3 = scmp.lt.s32.totalorder %s106_s4, %s106_s4 }
  0x48   :  { %p2534_p2 = scmp.ne.s32.totalorder %s106_s4, %s2533_s2  ;;  %p2539_p4 = scmp.lt.s32.totalorder %s2533_s2, %s2533_s2 }
  0x4a   :  { %p2540_p5 = por %p2539_p4, %p2538_p3 }
  0x4c   :  { %p2541_p6 = pnand %p2540_p5, %p2534_p2 }
  0x4e   :  { %2544 = shalt.err (!%p2541_p6)
}
  0x4f   :  { %111 = dma.hbm_to_vmem [thread:$0]  %s3228_s8, 1024, %s106_s4, [#allocation12], %s2625_s24, %s2625_s24, %s2626_s25  }
  0x50   :  { %s2553_s5 = scalar_lea.vmem %s120_s30, 1024  ;;  %p2558_p8 = scmp.lt.s32.totalorder %s120_s30, %s120_s30 }
  0x51   :  { %p2554_p7 = scmp.ne.s32.totalorder %s120_s30, %s2553_s5  ;;  %p2559_p9 = scmp.lt.s32.totalorder %s2553_s5, %s2553_s5 }
  0x53   :  { %p2560_p10 = por %p2559_p9, %p2558_p8 }
  0x55   :  { %p2561_p11 = pnand %p2560_p10, %p2554_p7 }
  0x57   :  { %2564 = shalt.err (!%p2561_p11)
}
  0x58   :  { %125 = dma.hbm_to_vmem [thread:$0]  %s3230_s10, 1024, %s120_s30, [#allocation15], %s2625_s24, %s2625_s24, %s2626_s25  }
  0x59   :  { %2605 = dma.done.wait [#allocation3], 768  }
  0x5a   :  { %2606 = vsyncadd [#allocation3], 4294966528 }
  0x5b   :  { %2607 = dma.done.wait [#allocation6], 1152  }
  0x5c   :  { %2608 = vsyncadd [#allocation6], 4294966144 }
  0x5d   :  { %2609 = dma.done.wait [#allocation9], 8192  }
  0x5e   :  { %2610 = vsyncadd [#allocation9], 4294959104 }
  0x5f   :  { %2611 = dma.done.wait [#allocation12], 2048  }
  0x60   :  { %2612 = vsyncadd [#allocation12], 4294965248 }
  0x61   :  { %2613 = dma.done.wait [#allocation15], 1024  }
  0x62   :  { %2614 = vsyncadd [#allocation15], 4294966272  ;;  %v3234_v0 = vmov 0.0   ;;  %vm2634_vm0 = vmmov 0   ;;  %v3236_v1 = vmov 0   ;;  %v2172_v2 = vld [vmem:[#allocation7 + $0x38] sm:$0xff]  }
  0x63   :  { %2057 = vmatprep.subr.bf16.mxu0 %v3234_v0  ;;  %2073 = vmatprep.mubr.msk.bf16.mxu0 %vm2634_vm0, %v3234_v0  ;;  %v2173_v3 = vld [vmem:[#allocation8 + $0xe4] ss:$16 sps:$4 sm:$0xff]   ;;  %v2175_v4 = vld [vmem:[#allocation8 + $0xe0] ss:$16 sps:$4 sm:$0xff]   ;;  %v2180_v8 = vld [vmem:[#allocation7 + $0x28] sm:$0xff]  }
  0x64   :  { %521 = vmatprep.mubr.bf16.mxu1 %v3236_v1  ;;  %2058 = vmatpush3.bf16.msra.mxu0 %v2172_v2  ;;  %v2176_v5 = vld [vmem:[#allocation7 + $0x30] sm:$0xff]   ;;  %v2184_v12 = vld [vmem:[#allocation7 + $0x20] sm:$0xff]   ;;  %v2188_v15 = vld [vmem:[#allocation7 + $0x18] sm:$0xff]  }
  0x65   :  { %489 = vmatprep.subr.bf16.mxu1 %v2173_v3  ;;  %2059 = vmatprep.subr.bf16.mxu0 %v3234_v0  ;;  %v2177_v6 = vld [vmem:[#allocation8 + $0xc4] ss:$16 sps:$4 sm:$0xff]   ;;  %v2179_v7 = vld [vmem:[#allocation8 + $0xc0] ss:$16 sps:$4 sm:$0xff]   ;;  %v2196_v21 = vld [vmem:[#allocation7 + $0x8] sm:$0xff]  }
  0x66   :  { %490 = vmatpush1.bf16.msra.mxu1 %v2175_v4  ;;  %v2181_v9 = vld [vmem:[#allocation8 + $0xa4] ss:$16 sps:$4 sm:$0xff]   ;;  %v2183_v10 = vld [vmem:[#allocation8 + $0xa0] ss:$16 sps:$4 sm:$0xff]   ;;  %v162_v25 = vld [vmem:[#allocation5] sm:$0xff] }
  0x67   :  { %491 = vmatprep.subr.bf16.mxu1 %v2177_v6  ;;  %v2185_v11 = vld [vmem:[#allocation8 + $0x84] ss:$16 sps:$4 sm:$0xff]   ;;  %v2187_v13 = vld [vmem:[#allocation8 + $0x80] ss:$16 sps:$4 sm:$0xff]   ;;  %v2206_v27 = vld [vmem:[#allocation8 + $0xec] ss:$16 sps:$4 sm:$0xff]   ;;  %v163_v30 = vpack.c.bf16 %v162_v25, %v162_v25 }
  0x68   :  { %2060 = vmatpush3.bf16.msra.mxu0 %v2176_v5  ;;  %v2189_v14 = vld [vmem:[#allocation8 + $0x64] ss:$16 sps:$4 sm:$0xff]   ;;  %v2191_v16 = vld [vmem:[#allocation8 + $0x60] ss:$16 sps:$4 sm:$0xff]   ;;  %v153_v28 = vld [vmem:[#allocation2] sm:$0xff] }
  0x69   :  { %2061 = vmatprep.subr.bf16.mxu0 %v3234_v0  ;;  %v2193_v17 = vld [vmem:[#allocation8 + $0x44] ss:$16 sps:$4 sm:$0xff]   ;;  %v2195_v19 = vld [vmem:[#allocation8 + $0x40] ss:$16 sps:$4 sm:$0xff]   ;;  %v2204_v32 = vld [vmem:[#allocation8 + $0xe8] ss:$16 sps:$4 sm:$0xff]  }
  0x6a   :  { %492 = vmatpush1.bf16.msra.mxu1 %v2179_v7  ;;  %v2192_v18 = vld [vmem:[#allocation7 + $0x10] sm:$0xff]   ;;  %v2200_v23 = vld [vmem:[#allocation7] sm:$0xff]   ;;  %v2212_v34 = vld [vmem:[#allocation8 + $0xcc] ss:$16 sps:$4 sm:$0xff]  }
  0x6b   :  { %493 = vmatprep.subr.bf16.mxu1 %v2181_v9  ;;  %v2197_v20 = vld [vmem:[#allocation8 + $0x24] ss:$16 sps:$4 sm:$0xff]   ;;  %v2199_v22 = vld [vmem:[#allocation8 + $0x20] ss:$16 sps:$4 sm:$0xff]   ;;  %v2210_v36 = vld [vmem:[#allocation8 + $0xc8] ss:$16 sps:$4 sm:$0xff]  }
  0x6c   :  { %2062 = vmatpush3.bf16.msra.mxu0 %v2180_v8  ;;  %v2201_v24 = vld [vmem:[#allocation8 + $0x4] ss:$16 sps:$4 sm:$0xff]   ;;  %v2203_v26 = vld [vmem:[#allocation8] ss:$16 sps:$4 sm:$0xff]   ;;  %v2218_v39 = vld [vmem:[#allocation8 + $0xac] ss:$16 sps:$4 sm:$0xff]  }
  0x6d   :  { %2063 = vmatprep.subr.bf16.mxu0 %v3234_v0  ;;  %v154_v29 = vld [vmem:[#allocation2 + $0x8] sm:$0xff]  ;;  %v155_v40 = vld [vmem:[#allocation2 + $0x10] sm:$0xff]  ;;  %v156_v41 = vld [vmem:[#allocation2 + $0x18] sm:$0xff] }
  0x6e   :  { %494 = vmatpush1.bf16.msra.mxu1 %v2183_v10  ;;  %v2764_v31 = vld [vmem:[#allocation10 + $0xe4] ss:$16 sps:$4 sm:$0xff]   ;;  %v2766_v33 = vpack.c.bf16 %v154_v29, %v153_v28  ;;  %v2768_v35 = vld [vmem:[#allocation10 + $0xe0] ss:$16 sps:$4 sm:$0xff]   ;;  %v2216_v43 = vld [vmem:[#allocation8 + $0xa8] ss:$16 sps:$4 sm:$0xff]   ;;  %v2782_v45 = vpack.c.bf16 %v156_v41, %v155_v40 }
  0x6f   :  { %495 = vmatprep.subr.bf16.mxu1 %v2185_v11  ;;  %v2771_v37 = vld [vmem:[#allocation10 + $0xc4] ss:$16 sps:$4 sm:$0xff]   ;;  %v2773_v38 = vld [vmem:[#allocation10 + $0xc0] ss:$16 sps:$4 sm:$0xff]   ;;  %v2224_v44 = vld [vmem:[#allocation8 + $0x8c] ss:$16 sps:$4 sm:$0xff]  }
  0x70   :  { %2064 = vmatpush3.bf16.msra.mxu0 %v2184_v12  ;;  %v2780_v42 = vld [vmem:[#allocation10 + $0xa4] ss:$16 sps:$4 sm:$0xff]   ;;  %v2785_v46 = vld [vmem:[#allocation10 + $0xa0] ss:$16 sps:$4 sm:$0xff]   ;;  %v2222_v48 = vld [vmem:[#allocation8 + $0x88] ss:$16 sps:$4 sm:$0xff]  }
  0x71   :  { %2065 = vmatprep.subr.bf16.mxu0 %v3234_v0  ;;  %v2788_v47 = vld [vmem:[#allocation10 + $0x84] ss:$16 sps:$4 sm:$0xff]   ;;  %v2790_v49 = vld [vmem:[#allocation10 + $0x80] ss:$16 sps:$4 sm:$0xff]   ;;  %v2230_v50 = vld [vmem:[#allocation8 + $0x6c] ss:$16 sps:$4 sm:$0xff]  }
  0x72   :  { %496 = vmatpush1.bf16.msra.mxu1 %v2187_v13  ;;  %v157_v51 = vld [vmem:[#allocation2 + $0x20] sm:$0xff]  ;;  %v158_v52 = vld [vmem:[#allocation2 + $0x28] sm:$0xff] }
  0x73   :  { %497 = vmatprep.subr.bf16.mxu1 %v2189_v14  ;;  %v2796_v53 = vld [vmem:[#allocation10 + $0x64] ss:$16 sps:$4 sm:$0xff]   ;;  %v2228_v54 = vld [vmem:[#allocation8 + $0x68] ss:$16 sps:$4 sm:$0xff]   ;;  %v2236_v55 = vld [vmem:[#allocation8 + $0x4c] ss:$16 sps:$4 sm:$0xff]   ;;  %v2798_v56 = vpack.c.bf16 %v158_v52, %v157_v51 }
  0x74   :  { %2066 = vmatpush3.bf16.msra.mxu0 %v2188_v15  ;;  %v2801_v57 = vld [vmem:[#allocation10 + $0x60] ss:$16 sps:$4 sm:$0xff]   ;;  %v2804_v58 = vld [vmem:[#allocation10 + $0x44] ss:$16 sps:$4 sm:$0xff]   ;;  %v2234_v59 = vld [vmem:[#allocation8 + $0x48] ss:$16 sps:$4 sm:$0xff]  }
  0x75   :  { %2067 = vmatprep.subr.bf16.mxu0 %v3234_v0  ;;  %v2806_v60 = vld [vmem:[#allocation10 + $0x40] ss:$16 sps:$4 sm:$0xff]   ;;  %v2242_v61 = vld [vmem:[#allocation8 + $0x2c] ss:$16 sps:$4 sm:$0xff]   ;;  %v2240_v62 = vld [vmem:[#allocation8 + $0x28] ss:$16 sps:$4 sm:$0xff]  }
  0x76   :  { %498 = vmatpush1.bf16.msra.mxu1 %v2191_v16  ;;  %v2810_v63 = vld [vmem:[#allocation10 + $0x24] ss:$16 sps:$4 sm:$0xff]   ;;  %v2248_v2 = vld [vmem:[#allocation8 + $0xc] ss:$16 sps:$4 sm:$0xff]   ;;  %v2814_v3 = vld [vmem:[#allocation10 + $0x20] ss:$16 sps:$4 sm:$0xff]  }
  0x77   :  { %499 = vmatprep.subr.bf16.mxu1 %v2193_v17  ;;  %v2816_v4 = vld [vmem:[#allocation10 + $0x4] ss:$16 sps:$4 sm:$0xff]   ;;  %v2246_v5 = vld [vmem:[#allocation8 + $0x8] ss:$16 sps:$4 sm:$0xff]   ;;  %v2820_v6 = vld [vmem:[#allocation10 + $0xec] ss:$16 sps:$4 sm:$0xff]  }
  0x78   :  { %2068 = vmatpush3.bf16.msra.mxu0 %v2192_v18  ;;  %v2822_v7 = vld [vmem:[#allocation10] ss:$16 sps:$4 sm:$0xff]   ;;  %v2825_v8 = vld [vmem:[#allocation10 + $0xe8] ss:$16 sps:$4 sm:$0xff]   ;;  %v2828_v9 = vld [vmem:[#allocation10 + $0xcc] ss:$16 sps:$4 sm:$0xff]  }
  0x79   :  { %2069 = vmatprep.subr.bf16.mxu0 %v3234_v0  ;;  %v2832_v10 = vld [vmem:[#allocation10 + $0xc8] ss:$16 sps:$4 sm:$0xff]   ;;  %v2835_v11 = vld [vmem:[#allocation10 + $0xac] ss:$16 sps:$4 sm:$0xff]  }
  0x7a   :  { %500 = vmatpush1.bf16.msra.mxu1 %v2195_v19  ;;  %v2846_v12 = vld [vmem:[#allocation10 + $0xa8] ss:$16 sps:$4 sm:$0xff]   ;;  %v2849_v13 = vld [vmem:[#allocation10 + $0x8c] ss:$16 sps:$4 sm:$0xff]  }
  0x7b   :  { %501 = vmatprep.subr.bf16.mxu1 %v2197_v20  ;;  %v2855_v14 = vld [vmem:[#allocation10 + $0x88] ss:$16 sps:$4 sm:$0xff]   ;;  %v2859_v15 = vld [vmem:[#allocation10 + $0x6c] ss:$16 sps:$4 sm:$0xff]  }
  0x7c   :  { %2070 = vmatpush3.bf16.msra.mxu0 %v2196_v21  ;;  %v2864_v16 = vld [vmem:[#allocation10 + $0x68] ss:$16 sps:$4 sm:$0xff]   ;;  %v2867_v17 = vld [vmem:[#allocation10 + $0x4c] ss:$16 sps:$4 sm:$0xff]  }
  0x7d   :  { %2071 = vmatprep.subr.bf16.mxu0 %v3234_v0  ;;  %v2873_v18 = vld [vmem:[#allocation10 + $0x48] ss:$16 sps:$4 sm:$0xff]   ;;  %v2877_v19 = vld [vmem:[#allocation10 + $0x2c] ss:$16 sps:$4 sm:$0xff]  }
  0x7e   :  { %502 = vmatpush1.bf16.msra.mxu1 %v2199_v22  ;;  %v2882_v20 = vld [vmem:[#allocation10 + $0x28] ss:$16 sps:$4 sm:$0xff]   ;;  %v2885_v21 = vld [vmem:[#allocation10 + $0xc] ss:$16 sps:$4 sm:$0xff]  }
  0x7f   :  { %503 = vmatprep.subr.bf16.mxu1 %v2201_v24  ;;  %v2890_v22 = vld [vmem:[#allocation10 + $0x8] ss:$16 sps:$4 sm:$0xff]  }
  0x80   :  { %2072 = vmatpush3.bf16.msra.mxu0 %v2200_v23  ;;  %v309_v23 = vlaneseq }
  0x81   :  { %552 = vmatprep.subr.bf16.mxu0 %v2206_v27  ;;  %v307_v27 = vld [vmem:[%s3226_s6] sm:$0xf] }
  0x82   :  { %504 = vmatpush1.bf16.msra.mxu1 %v2203_v26  ;;  %v310_v24 = vshrl.u32 %v309_v23, 7 }
  0x83   :  { %2074 = vmatmul.mubr.bf16.vlgmr.msra.gmra.mxu0 %v163_v30  ;;  %807 = vmatprep.subr.bf16.mxu1 %v2764_v31 }
  0x84   :  { %553 = vmatpush1.bf16.msra.mxu0 %v2204_v32  ;;  %584 = vmatprep.mubr.bf16.mxu0 %v3236_v1  ;;  %v311_v25 = vsub.s32 0, %v310_v24  ;;  %v315_v28 = vsub.s32 1, %v310_v24 }
  0x85   :  { %522 = vmatmul.mubr.bf16.vlgmr.msra.gmra.mxu1 %v2766_v33  ;;  %554 = vmatprep.subr.bf16.mxu0 %v2212_v34 }
  0x86   :  { %808 = vmatpush1.bf16.msra.mxu1 %v2768_v35  ;;  %531 = vmatprep.mubr.bf16.mxu1 %v3236_v1  ;;  %v312_v32 = vrot.slane %v307_v27, %v311_v25 }
  0x87   :  { %809 = vmatprep.subr.bf16.mxu1 %v2771_v37 }
  0x88   :  { %555 = vmatpush1.bf16.msra.mxu0 %v2210_v36  ;;  %v316_v36 = vrot.slane %v307_v27, %v315_v28 }
  0x89   :  { %556 = vmatprep.subr.bf16.mxu0 %v2218_v39 }
  0x8a   :  { %810 = vmatpush1.bf16.msra.mxu1 %v2773_v38 }
  0x8b   :  { %811 = vmatprep.subr.bf16.mxu1 %v2780_v42 }
  0x8c   :  { %557 = vmatpush1.bf16.msra.mxu0 %v2216_v43 }
  0x8d   :  { %558 = vmatprep.subr.bf16.mxu0 %v2224_v44  ;;  %532 = vmatmul.mubr.bf16.gmra.mxu1 %v2782_v45 }
  0x8e   :  { %812 = vmatpush1.bf16.msra.mxu1 %v2785_v46  ;;  %541 = vmatprep.mubr.bf16.mxu1 %v3236_v1 }
  0x8f   :  { %813 = vmatprep.subr.bf16.mxu1 %v2788_v47 }
  0x90   :  { %559 = vmatpush1.bf16.msra.mxu0 %v2222_v48 }
  0x91   :  { %560 = vmatprep.subr.bf16.mxu0 %v2230_v50 }
  0x92   :  { %814 = vmatpush1.bf16.msra.mxu1 %v2790_v49 }
  0x93   :  { %815 = vmatprep.subr.bf16.mxu1 %v2796_v53 }
  0x94   :  { %561 = vmatpush1.bf16.msra.mxu0 %v2228_v54 }
  0x95   :  { %562 = vmatprep.subr.bf16.mxu0 %v2236_v55  ;;  %542 = vmatmul.mubr.bf16.gmra.mxu1 %v2798_v56 }
  0x96   :  { %816 = vmatpush1.bf16.msra.mxu1 %v2801_v57  ;;  %839 = vmatprep.mubr.bf16.mxu1 %v3236_v1 }
  0x97   :  { %817 = vmatprep.subr.bf16.mxu1 %v2804_v58 }
  0x98   :  { %563 = vmatpush1.bf16.msra.mxu0 %v2234_v59 }
  0x99   :  { %564 = vmatprep.subr.bf16.mxu0 %v2242_v61 }
  0x9a   :  { %818 = vmatpush1.bf16.msra.mxu1 %v2806_v60 }
  0x9b   :  { %819 = vmatprep.subr.bf16.mxu1 %v2810_v63 }
  0x9c   :  { %565 = vmatpush1.bf16.msra.mxu0 %v2240_v62 }
  0x9d   :  { %566 = vmatprep.subr.bf16.mxu0 %v2248_v2 }
  0x9e   :  { %820 = vmatpush1.bf16.msra.mxu1 %v2814_v3 }
  0x9f   :  { %821 = vmatprep.subr.bf16.mxu1 %v2816_v4 }
  0xa0   :  { %567 = vmatpush1.bf16.msra.mxu0 %v2246_v5 }
  0xa1   :  { %848 = vmatprep.subr.bf16.mxu0 %v2820_v6 }
  0xa2   :  { %822 = vmatpush1.bf16.msra.mxu1 %v2822_v7 }
  0xa3   :  { %585 = vmatmul.mubr.bf16.vlgmr.msra.gmra.mxu0 %v2766_v33  ;;  %918 = vmatprep.subr.bf16.mxu1 %v2764_v31 }
  0xa4   :  { %849 = vmatpush1.bf16.msra.mxu0 %v2825_v8  ;;  %594 = vmatprep.mubr.bf16.mxu0 %v3236_v1 }
  0xa5   :  { %840 = vmatmul.mubr.bf16.vlgmr.msra.gmra.mxu1 %v3236_v1  ;;  %850 = vmatprep.subr.bf16.mxu0 %v2828_v9 }
  0xa6   :  { %919 = vmatpush1.bf16.msra.mxu1 %v2768_v35  ;;  %950 = vmatprep.mubr.bf16.mxu1 %v3236_v1 }
  0xa7   :  { %920 = vmatprep.subr.bf16.mxu1 %v2771_v37 }
  0xa8   :  { %851 = vmatpush1.bf16.msra.mxu0 %v2832_v10 }
  0xa9   :  { %852 = vmatprep.subr.bf16.mxu0 %v2835_v11 }
  0xaa   :  { %921 = vmatpush1.bf16.msra.mxu1 %v2773_v38 }
  0xab   :  { %595 = vmatmul.mubr.bf16.gmra.mxu0 %v2782_v45  ;;  %922 = vmatprep.subr.bf16.mxu1 %v2780_v42 }
  0xac   :  { %853 = vmatpush1.bf16.msra.mxu0 %v2846_v12  ;;  %604 = vmatprep.mubr.bf16.mxu0 %v3236_v1 }
  0xad   :  { %854 = vmatprep.subr.bf16.mxu0 %v2849_v13 }
  0xae   :  { %923 = vmatpush1.bf16.msra.mxu1 %v2785_v46 }
  0xaf   :  { %924 = vmatprep.subr.bf16.mxu1 %v2788_v47 }
  0xb0   :  { %855 = vmatpush1.bf16.msra.mxu0 %v2855_v14 }
  0xb1   :  { %856 = vmatprep.subr.bf16.mxu0 %v2859_v15 }
  0xb2   :  { %925 = vmatpush1.bf16.msra.mxu1 %v2790_v49 }
  0xb3   :  { %605 = vmatmul.mubr.bf16.gmra.mxu0 %v2798_v56  ;;  %926 = vmatprep.subr.bf16.mxu1 %v2796_v53 }
  0xb4   :  { %857 = vmatpush1.bf16.msra.mxu0 %v2864_v16  ;;  %880 = vmatprep.mubr.bf16.mxu0 %v3236_v1 }
  0xb5   :  { %858 = vmatprep.subr.bf16.mxu0 %v2867_v17 }
  0xb6   :  { %927 = vmatpush1.bf16.msra.mxu1 %v2801_v57 }
  0xb7   :  { %928 = vmatprep.subr.bf16.mxu1 %v2804_v58 }
  0xb8   :  { %859 = vmatpush1.bf16.msra.mxu0 %v2873_v18 }
  0xb9   :  { %860 = vmatprep.subr.bf16.mxu0 %v2877_v19 }
  0xba   :  { %929 = vmatpush1.bf16.msra.mxu1 %v2806_v60 }
  0xbb   :  { %930 = vmatprep.subr.bf16.mxu1 %v2810_v63 }
  0xbc   :  { %861 = vmatpush1.bf16.msra.mxu0 %v2882_v20 }
  0xbd   :  { %862 = vmatprep.subr.bf16.mxu0 %v2885_v21 }
  0xbe   :  { %931 = vmatpush1.bf16.msra.mxu1 %v2814_v3 }
  0xbf   :  { %932 = vmatprep.subr.bf16.mxu1 %v2816_v4 }
  0xc0   :  { %863 = vmatpush1.bf16.msra.mxu0 %v2890_v22 }
  0xc1   :  { %959 = vmatprep.subr.bf16.mxu0 %v2820_v6 }
  0xc2   :  { %933 = vmatpush1.bf16.msra.mxu1 %v2822_v7 }
  0xc3   :  { %881 = vmatmul.mubr.bf16.vlgmr.msra.gmra.mxu0 %v3236_v1  ;;  %1029 = vmatprep.subr.bf16.mxu1 %v2764_v31 }
  0xc4   :  { %960 = vmatpush1.bf16.msra.mxu0 %v2825_v8  ;;  %991 = vmatprep.mubr.bf16.mxu0 %v3236_v1 }
  0xc5   :  { %961 = vmatprep.subr.bf16.mxu0 %v2828_v9 }
  0xc8   :  { %962 = vmatpush1.bf16.msra.mxu0 %v2832_v10 }
  0xc9   :  { %963 = vmatprep.subr.bf16.mxu0 %v2835_v11 }
  0xcc   :  { %964 = vmatpush1.bf16.msra.mxu0 %v2846_v12 }
  0xcd   :  { %965 = vmatprep.subr.bf16.mxu0 %v2849_v13 }
  0xd0   :  { %966 = vmatpush1.bf16.msra.mxu0 %v2855_v14 }
  0xd1   :  { %967 = vmatprep.subr.bf16.mxu0 %v2859_v15 }
  0xd4   :  { %968 = vmatpush1.bf16.msra.mxu0 %v2864_v16 }
  0xd5   :  { %969 = vmatprep.subr.bf16.mxu0 %v2867_v17 }
  0xd8   :  { %970 = vmatpush1.bf16.msra.mxu0 %v2873_v18 }
  0xd9   :  { %971 = vmatprep.subr.bf16.mxu0 %v2877_v19 }
  0xdc   :  { %972 = vmatpush1.bf16.msra.mxu0 %v2882_v20 }
  0xdd   :  { %973 = vmatprep.subr.bf16.mxu0 %v2885_v21 }
  0xe0   :  { %974 = vmatpush1.bf16.msra.mxu0 %v2890_v22 }
  0xe1   :  { %1070 = vmatprep.subr.bf16.mxu0 %v2820_v6 }
 0x143   :  { %v2917_v26 = vpop.f32.mrf.mxu0 }
 0x144   :  { %3238 = vst [vmem:[#allocation26_spill] sm:$0xff] %v2917_v26 }
 0x145   :  { %v2075_v29 = vpop.f32.mrf.mxu0  ;;  %v523_v30 = vpop.f32.mrf.mxu1 }
 0x146   :  { %v319_v29 = vsub.s32 2, %v310_v24 }
 0x147   :  { %v272_v33 = vpop.f32.mrf.mxu0  ;;  %v525_v34 = vpop.f32.mrf.mxu1 }
 0x149   :  { %v2076_v39 = vpop.f32.mrf.mxu0  ;;  %v527_v40 = vpop.f32.mrf.mxu1 }
 0x14a   :  { %v2922_v41 = vadd.f32 %v527_v40, %v312_v32  ;;  %v323_v39 = vsub.s32 3, %v310_v24 }
 0x14b   :  { %v529_v43 = vpop.f32.mrf.mxu1 }
 0x14c   :  { %v2924_v44 = vadd.f32 %v529_v43, %v316_v36 }
 0x14d   :  { %v533_v45 = vpop.f32.mrf.mxu1 }
 0x14e   :  { %v2926_v48 = vadd.f32 %v533_v45, %v312_v32  ;;  %v320_v45 = vrot.slane %v307_v27, %v319_v29 }
 0x14f   :  { %v535_v50 = vpop.f32.mrf.mxu1 }
 0x150   :  { %v2928_v51 = vadd.f32 %v535_v50, %v316_v36 }
 0x151   :  { %v537_v52 = vpop.f32.mrf.mxu1 }
 0x152   :  { %v2930_v54 = vadd.f32 %v537_v52, %v312_v32 }
 0x153   :  { %v539_v55 = vpop.f32.mrf.mxu1 }
 0x154   :  { %3239 = vst [vmem:[#allocation27_spill] sm:$0xff] %v2930_v54  ;;  %v2932_v56 = vadd.f32 %v539_v55, %v316_v36  ;;  %v524_v55 = vadd.f32 %v523_v30, %v312_v32 }
 0x155   :  { %v543_v59 = vpop.f32.mrf.mxu1 }
 0x156   :  { %3240 = vst [vmem:[#allocation28_spill] sm:$0xff] %v2932_v56  ;;  %v2934_v61 = vadd.f32 %v543_v59, %v312_v32  ;;  %v324_v59 = vrot.slane %v307_v27, %v323_v39 }
 0x157   :  { %v545_v62 = vpop.f32.mrf.mxu1 }
 0x158   :  { %3241 = vst [vmem:[#allocation29_spill] sm:$0xff] %v2934_v61  ;;  %v2936_v2 = vadd.f32 %v545_v62, %v316_v36  ;;  %v526_v62 = vadd.f32 %v525_v34, %v316_v36 }
 0x159   :  { %v547_v5 = vpop.f32.mrf.mxu1 }
 0x15a   :  { %3242 = vst [vmem:[#allocation30_spill] sm:$0xff] %v2936_v2  ;;  %v2938_v23 = vadd.f32 %v547_v5, %v312_v32 }
 0x15b   :  { %v549_v25 = vpop.f32.mrf.mxu1 }
 0x15c   :  { %3243 = vst [vmem:[#allocation31_spill] sm:$0xff] %v2938_v23  ;;  %v2940_v28 = vadd.f32 %v549_v25, %v316_v36 }
 0x15e   :  { %3244 = vst [vmem:[#allocation32_spill] sm:$0xff] %v2940_v28 }
 0x163   :  { %v586_v33 = vpop.f32.mrf.mxu0 }
 0x165   :  { %v841_v40 = vpop.f32.mrf.mxu1  ;;  %v588_v43 = vpop.f32.mrf.mxu0 }
 0x166   :  { %v889_v5 = vadd.f32 %v841_v40, %v524_v55 }
 0x167   :  { %v843_v50 = vpop.f32.mrf.mxu1  ;;  %v590_v52 = vpop.f32.mrf.mxu0 }
 0x168   :  { %v2942_v0 = vadd.f32 %v590_v52, %v320_v45  ;;  %v890_v25 = vadd.f32 %v843_v50, %v526_v62  ;;  %v1973_v56 = vmul.f32 -1.442695, %v889_v5  ;;  %v587_v62 = vadd.f32 %v586_v33, %v320_v45 }
 0x169   :  { %v592_v1 = vpop.f32.mrf.mxu0  ;;  %v845_v26 = vpop.f32.mrf.mxu1 }
 0x16a   :  { %v2944_v23 = vadd.f32 %v592_v1, %v324_v59  ;;  %v1974_v54 = vmul.f32 -1.442695, %v890_v25  ;;  %2300 = vpow2.f32 %v1973_v56 }
 0x16b   :  { %v596_v28 = vpop.f32.mrf.mxu0  ;;  %v846_v2 = vpop.f32.mrf.mxu1 }
 0x16c   :  { %v2946_v61 = vadd.f32 %v596_v28, %v320_v45  ;;  %2302 = vpow2.f32 %v1974_v54 }
 0x16d   :  { %v598_v24 = vpop.f32.mrf.mxu0 }
 0x16e   :  { %v2948_v29 = vadd.f32 %v598_v24, %v324_v59  ;;  %v589_v24 = vadd.f32 %v588_v43, %v324_v59 }
 0x16f   :  { %v600_v30 = vpop.f32.mrf.mxu0 }
 0x170   :  { %v2950_v27 = vadd.f32 %v600_v30, %v320_v45 }
 0x171   :  { %v602_v32 = vpop.f32.mrf.mxu0 }
 0x172   :  { %v2952_v34 = vadd.f32 %v602_v32, %v324_v59 }
 0x173   :  { %v606_v1 = vpop.f32.mrf.mxu0 }
 0x174   :  { %v2954_v26 = vadd.f32 %v606_v1, %v320_v45 }
 0x175   :  { %v608_v36 = vpop.f32.mrf.mxu0 }
 0x176   :  { %3245 = vst [vmem:[#allocation33_spill] sm:$0xff] %v2954_v26  ;;  %v2956_v2 = vadd.f32 %v608_v36, %v324_v59 }
 0x177   :  { %v610_v28 = vpop.f32.mrf.mxu0  ;;  %v2301_v52 = vpop.eup %2300 }
 0x178   :  { %3246 = vst [vmem:[#allocation34_spill] sm:$0xff] %v2956_v2  ;;  %v2958_v39 = vadd.f32 %v610_v28, %v320_v45  ;;  %v902_v5 = vadd.f32 1.0, %v2301_v52 }
 0x179   :  { %v612_v40 = vpop.f32.mrf.mxu0  ;;  %v2303_v55 = vpop.eup %2302 }
 0x17a   :  { %3247 = vst [vmem:[#allocation35_spill] sm:$0xff] %v2958_v39  ;;  %v2960_v50 = vadd.f32 %v612_v40, %v324_v59  ;;  %v903_v56 = vadd.f32 1.0, %v2303_v55  ;;  %2304 = vrcp.f32 %v902_v5 }
 0x17c   :  { %3248 = vst [vmem:[#allocation36_spill] sm:$0xff] %v2960_v50  ;;  %2306 = vrcp.f32 %v903_v56 }
 0x183   :  { %v882_v25 = vpop.f32.mrf.mxu0 }
 0x184   :  { %v891_v54 = vadd.f32 %v882_v25, %v587_v62 }
 0x185   :  { %v884_v30 = vpop.f32.mrf.mxu0 }
 0x186   :  { %v1975_v32 = vmul.f32 -1.442695, %v891_v54  ;;  %v892_v1 = vadd.f32 %v884_v30, %v589_v24 }
 0x187   :  { %v886_v36 = vpop.f32.mrf.mxu0  ;;  %v2305_v39 = vpop.eup %2304 }
 0x188   :  { %2308 = vpow2.f32 %v1975_v32 }
 0x189   :  { %2310 = vtanh.f32 %v892_v1  ;;  %v887_v28 = vpop.f32.mrf.mxu0  ;;  %v2307_v40 = vpop.eup %2306 }
 0x18a   :  { %v912_v33 = vmul.f32 0.0, %v2307_v40 }
 0x195   :  { %v2309_v50 = vpop.eup %2308 }
 0x196   :  { %v2311_v2 = vpop.eup %2310  ;;  %v904_v26 = vadd.f32 1.0, %v2309_v50 }
 0x197   :  { %v913_v45 = vmul.f32 %v2311_v2, %v2305_v39 }
 0x198   :  { %2312 = vrcp.f32 %v904_v26  ;;  %v3249_v26 = vmov 0  }
 0x199   :  { %v2962_v52 = vadd.f32 %v913_v45, %v912_v33 }
 0x19b   :  { %2314 = vtanh.f32 %v2962_v52 }
 0x1a5   :  { %v2313_v43 = vpop.eup %2312 }
 0x1a8   :  { %v2315_v59 = vpop.eup %2314 }
 0x1a9   :  { %v2965_v55 = vmul.f32 %v2315_v59, %v2313_v43 }
 0x1ab   :  { %v917_v62 = vpack.c.bf16 %v2965_v55, %v2965_v55 }
 0x1ad   :  { %951 = vmatmul.mubr.bf16.vlgmr.msra.gmra.mxu1 %v917_v62  ;;  %992 = vmatmul.mubr.bf16.vlgmr.msra.gmra.mxu0 %v917_v62 }
 0x1ae   :  { %1030 = vmatpush1.bf16.msra.mxu1 %v2768_v35  ;;  %1071 = vmatpush1.bf16.msra.mxu0 %v2825_v8 }
 0x1af   :  { %1031 = vmatprep.subr.bf16.mxu1 %v2771_v37  ;;  %1072 = vmatprep.subr.bf16.mxu0 %v2828_v9 }
 0x1b0   :  { %1061 = vmatprep.mubr.bf16.mxu1 %v3249_v26  ;;  %1102 = vmatprep.mubr.bf16.mxu0 %v3249_v26 }
 0x1b2   :  { %1032 = vmatpush1.bf16.msra.mxu1 %v2773_v38  ;;  %1073 = vmatpush1.bf16.msra.mxu0 %v2832_v10 }
 0x1b3   :  { %1033 = vmatprep.subr.bf16.mxu1 %v2780_v42  ;;  %1074 = vmatprep.subr.bf16.mxu0 %v2835_v11 }
 0x1b6   :  { %1034 = vmatpush1.bf16.msra.mxu1 %v2785_v46  ;;  %1075 = vmatpush1.bf16.msra.mxu0 %v2846_v12 }
 0x1b7   :  { %1035 = vmatprep.subr.bf16.mxu1 %v2788_v47  ;;  %1076 = vmatprep.subr.bf16.mxu0 %v2849_v13 }
 0x1ba   :  { %1036 = vmatpush1.bf16.msra.mxu1 %v2790_v49  ;;  %1077 = vmatpush1.bf16.msra.mxu0 %v2855_v14 }
 0x1bb   :  { %1037 = vmatprep.subr.bf16.mxu1 %v2796_v53  ;;  %1078 = vmatprep.subr.bf16.mxu0 %v2859_v15 }
 0x1be   :  { %1038 = vmatpush1.bf16.msra.mxu1 %v2801_v57  ;;  %1079 = vmatpush1.bf16.msra.mxu0 %v2864_v16 }
 0x1bf   :  { %1039 = vmatprep.subr.bf16.mxu1 %v2804_v58  ;;  %1080 = vmatprep.subr.bf16.mxu0 %v2867_v17 }
 0x1c2   :  { %1040 = vmatpush1.bf16.msra.mxu1 %v2806_v60  ;;  %1081 = vmatpush1.bf16.msra.mxu0 %v2873_v18 }
 0x1c3   :  { %1041 = vmatprep.subr.bf16.mxu1 %v2810_v63  ;;  %1082 = vmatprep.subr.bf16.mxu0 %v2877_v19 }
 0x1c6   :  { %1042 = vmatpush1.bf16.msra.mxu1 %v2814_v3  ;;  %1083 = vmatpush1.bf16.msra.mxu0 %v2882_v20 }
 0x1c7   :  { %1043 = vmatprep.subr.bf16.mxu1 %v2816_v4  ;;  %1084 = vmatprep.subr.bf16.mxu0 %v2885_v21 }
 0x1ca   :  { %1044 = vmatpush1.bf16.msra.mxu1 %v2822_v7  ;;  %1085 = vmatpush1.bf16.msra.mxu0 %v2890_v22 }
 0x1cb   :  { %1140 = vmatprep.subr.bf16.mxu1 %v2764_v31  ;;  %1181 = vmatprep.subr.bf16.mxu0 %v2820_v6 }
 0x26d   :  { %v952_v2 = vpop.f32.mrf.mxu1  ;;  %v993_v39 = vpop.f32.mrf.mxu0 }
 0x26e   :  { %v1000_v50 = vadd.f32 %v952_v2, %v2922_v41  ;;  %v1002_v28 = vadd.f32 %v993_v39, %v2942_v0 }
 0x26f   :  { %v954_v5 = vpop.f32.mrf.mxu1  ;;  %v995_v56 = vpop.f32.mrf.mxu0 }
 0x270   :  { %v1976_v25 = vmul.f32 -1.442695, %v1000_v50  ;;  %v1001_v24 = vadd.f32 %v954_v5, %v2924_v44  ;;  %v1978_v40 = vmul.f32 -1.442695, %v1002_v28  ;;  %v1003_v33 = vadd.f32 %v995_v56, %v2944_v23 }
 0x271   :  { %v956_v54 = vpop.f32.mrf.mxu1  ;;  %v997_v30 = vpop.f32.mrf.mxu0 }
 0x272   :  { %2316 = vpow2.f32 %v1976_v25  ;;  %v1977_v32 = vmul.f32 -1.442695, %v1001_v24 }
 0x273   :  { %v957_v1 = vpop.f32.mrf.mxu1  ;;  %v998_v36 = vpop.f32.mrf.mxu0 }
 0x274   :  { %2318 = vpow2.f32 %v1977_v32 }
 0x275   :  { %2320 = vpow2.f32 %v1978_v40 }
 0x276   :  { %2322 = vtanh.f32 %v1003_v33 }
 0x27f   :  { %v2317_v45 = vpop.eup %2316 }
 0x280   :  { %v1013_v43 = vadd.f32 1.0, %v2317_v45 }
 0x281   :  { %v2319_v41 = vpop.eup %2318 }
 0x282   :  { %2324 = vrcp.f32 %v1013_v43  ;;  %v1014_v59 = vadd.f32 1.0, %v2319_v41  ;;  %v2321_v44 = vpop.eup %2320 }
 0x283   :  { %v2323_v62 = vpop.eup %2322  ;;  %v1015_v25 = vadd.f32 1.0, %v2321_v44 }
 0x284   :  { %2326 = vrcp.f32 %v1014_v59 }
 0x285   :  { %2328 = vrcp.f32 %v1015_v25 }
 0x28f   :  { %v2325_v2 = vpop.eup %2324 }
 0x290   :  { %v1024_v50 = vmul.f32 %v2325_v2, %v2323_v62 }
 0x291   :  { %v2327_v5 = vpop.eup %2326 }
 0x292   :  { %v1023_v24 = vmul.f32 %v2327_v5, %v2962_v52  ;;  %v2329_v23 = vpop.eup %2328 }
 0x294   :  { %v3008_v0 = vadd.f32 %v1024_v50, %v1023_v24 }
 0x296   :  { %2330 = vtanh.f32 %v3008_v0 }
 0x2a3   :  { %v2331_v39 = vpop.eup %2330 }
 0x2a4   :  { %v3011_v56 = vmul.f32 %v2331_v39, %v2329_v23 }
 0x2a6   :  { %v1028_v54 = vpack.c.bf16 %v3011_v56, %v3011_v56 }
 0x2a8   :  { %1062 = vmatmul.mubr.bf16.vlgmr.msra.gmra.mxu1 %v1028_v54  ;;  %1103 = vmatmul.mubr.bf16.vlgmr.msra.gmra.mxu0 %v1028_v54 }
 0x2a9   :  { %1141 = vmatpush1.bf16.msra.mxu1 %v2768_v35  ;;  %1182 = vmatpush1.bf16.msra.mxu0 %v2825_v8 }
 0x2aa   :  { %1142 = vmatprep.subr.bf16.mxu1 %v2771_v37  ;;  %1183 = vmatprep.subr.bf16.mxu0 %v2828_v9 }
 0x2ab   :  { %1172 = vmatprep.mubr.bf16.mxu1 %v3249_v26  ;;  %1213 = vmatprep.mubr.bf16.mxu0 %v3249_v26 }
 0x2ad   :  { %1143 = vmatpush1.bf16.msra.mxu1 %v2773_v38  ;;  %1184 = vmatpush1.bf16.msra.mxu0 %v2832_v10 }
 0x2ae   :  { %1144 = vmatprep.subr.bf16.mxu1 %v2780_v42  ;;  %1185 = vmatprep.subr.bf16.mxu0 %v2835_v11 }
 0x2b1   :  { %1145 = vmatpush1.bf16.msra.mxu1 %v2785_v46  ;;  %1186 = vmatpush1.bf16.msra.mxu0 %v2846_v12 }
 0x2b2   :  { %1146 = vmatprep.subr.bf16.mxu1 %v2788_v47  ;;  %1187 = vmatprep.subr.bf16.mxu0 %v2849_v13 }
 0x2b5   :  { %1147 = vmatpush1.bf16.msra.mxu1 %v2790_v49  ;;  %1188 = vmatpush1.bf16.msra.mxu0 %v2855_v14 }
 0x2b6   :  { %1148 = vmatprep.subr.bf16.mxu1 %v2796_v53  ;;  %1189 = vmatprep.subr.bf16.mxu0 %v2859_v15 }
 0x2b9   :  { %1149 = vmatpush1.bf16.msra.mxu1 %v2801_v57  ;;  %1190 = vmatpush1.bf16.msra.mxu0 %v2864_v16 }
 0x2ba   :  { %1150 = vmatprep.subr.bf16.mxu1 %v2804_v58  ;;  %1191 = vmatprep.subr.bf16.mxu0 %v2867_v17 }
 0x2bd   :  { %1151 = vmatpush1.bf16.msra.mxu1 %v2806_v60  ;;  %1192 = vmatpush1.bf16.msra.mxu0 %v2873_v18 }
 0x2be   :  { %1152 = vmatprep.subr.bf16.mxu1 %v2810_v63  ;;  %1193 = vmatprep.subr.bf16.mxu0 %v2877_v19 }
 0x2c1   :  { %1153 = vmatpush1.bf16.msra.mxu1 %v2814_v3  ;;  %1194 = vmatpush1.bf16.msra.mxu0 %v2882_v20 }
 0x2c2   :  { %1154 = vmatprep.subr.bf16.mxu1 %v2816_v4  ;;  %1195 = vmatprep.subr.bf16.mxu0 %v2885_v21 }
 0x2c5   :  { %1155 = vmatpush1.bf16.msra.mxu1 %v2822_v7  ;;  %1196 = vmatpush1.bf16.msra.mxu0 %v2890_v22 }
 0x2c6   :  { %1251 = vmatprep.subr.bf16.mxu1 %v2764_v31  ;;  %1292 = vmatprep.subr.bf16.mxu0 %v2820_v6 }
 0x368   :  { %v1063_v52 = vpop.f32.mrf.mxu1  ;;  %v1104_v30 = vpop.f32.mrf.mxu0 }
 0x369   :  { %v1111_v32 = vadd.f32 %v1063_v52, %v2926_v48  ;;  %v1113_v31 = vadd.f32 %v1104_v30, %v2946_v61 }
 0x36a   :  { %v1065_v1 = vpop.f32.mrf.mxu1  ;;  %v1106_v36 = vpop.f32.mrf.mxu0 }
 0x36b   :  { %v1979_v28 = vmul.f32 -1.442695, %v1111_v32  ;;  %v1112_v40 = vadd.f32 %v1065_v1, %v2928_v51  ;;  %v1981_v44 = vmul.f32 -1.442695, %v1113_v31  ;;  %v1114_v62 = vadd.f32 %v1106_v36, %v2948_v29 }
 0x36c   :  { %v1067_v33 = vpop.f32.mrf.mxu1  ;;  %v1108_v45 = vpop.f32.mrf.mxu0 }
 0x36d   :  { %2332 = vpow2.f32 %v1979_v28  ;;  %v1980_v43 = vmul.f32 -1.442695, %v1112_v40 }
 0x36e   :  { %v1068_v41 = vpop.f32.mrf.mxu1  ;;  %v1109_v59 = vpop.f32.mrf.mxu0 }
 0x36f   :  { %2334 = vpow2.f32 %v1980_v43 }
 0x370   :  { %2336 = vpow2.f32 %v1981_v44 }
 0x371   :  { %2338 = vtanh.f32 %v1114_v62 }
 0x37a   :  { %v2333_v2 = vpop.eup %2332 }
 0x37b   :  { %v1124_v50 = vadd.f32 1.0, %v2333_v2 }
 0x37c   :  { %v2335_v48 = vpop.eup %2334 }
 0x37d   :  { %2340 = vrcp.f32 %v1124_v50  ;;  %v1125_v5 = vadd.f32 1.0, %v2335_v48  ;;  %v2337_v51 = vpop.eup %2336 }
 0x37e   :  { %v2339_v25 = vpop.eup %2338  ;;  %v1126_v54 = vadd.f32 1.0, %v2337_v51 }
 0x37f   :  { %2342 = vrcp.f32 %v1125_v5 }
 0x380   :  { %2344 = vrcp.f32 %v1126_v54 }
 0x38a   :  { %v2341_v24 = vpop.eup %2340 }
 0x38b   :  { %v1135_v23 = vmul.f32 %v2341_v24, %v2339_v25 }
 0x38c   :  { %v2343_v39 = vpop.eup %2342 }
 0x38d   :  { %v1134_v52 = vmul.f32 %v2343_v39, %v3008_v0  ;;  %v2345_v29 = vpop.eup %2344  ;;  %v3251_v0 = vld [vmem:[#allocation28_spill] sm:$0xff] }
 0x38f   :  { %v3054_v61 = vadd.f32 %v1135_v23, %v1134_v52 }
 0x391   :  { %2346 = vtanh.f32 %v3054_v61 }
 0x39e   :  { %v2347_v30 = vpop.eup %2346 }
 0x39f   :  { %v3057_v32 = vmul.f32 %v2347_v30, %v2345_v29  ;;  %v2397_v29 = vld [vmem:[#allocation10 + $0xe0] ss:$16 sps:$4 sm:$0xff]   ;;  %v2398_v30 = vld [vmem:[#allocation10 + $0xc4] ss:$16 sps:$4 sm:$0xff]  }
 0x3a1   :  { %v1139_v1 = vpack.c.bf16 %v3057_v32, %v3057_v32 }
 0x3a3   :  { %1173 = vmatmul.mubr.bf16.vlgmr.msra.gmra.mxu1 %v1139_v1  ;;  %1214 = vmatmul.mubr.bf16.vlgmr.msra.gmra.mxu0 %v1139_v1  ;;  %v2400_v1 = vld [vmem:[#allocation10 + $0xa4] ss:$16 sps:$4 sm:$0xff]  }
 0x3a4   :  { %1252 = vmatpush1.bf16.msra.mxu1 %v2768_v35  ;;  %1293 = vmatpush1.bf16.msra.mxu0 %v2825_v8  ;;  %v2396_v35 = vld [vmem:[#allocation10 + $0xe4] ss:$16 sps:$4 sm:$0xff]  }
 0x3a5   :  { %1253 = vmatprep.subr.bf16.mxu1 %v2771_v37  ;;  %1294 = vmatprep.subr.bf16.mxu0 %v2828_v9 }
 0x3a6   :  { %1283 = vmatprep.mubr.bf16.mxu1 %v3249_v26  ;;  %1324 = vmatprep.mubr.bf16.mxu0 %v3249_v26 }
 0x3a8   :  { %1254 = vmatpush1.bf16.msra.mxu1 %v2773_v38  ;;  %1295 = vmatpush1.bf16.msra.mxu0 %v2832_v10 }
 0x3a9   :  { %1255 = vmatprep.subr.bf16.mxu1 %v2780_v42  ;;  %1296 = vmatprep.subr.bf16.mxu0 %v2835_v11  ;;  %v3250_v42 = vld [vmem:[#allocation27_spill] sm:$0xff] }
 0x3ac   :  { %1256 = vmatpush1.bf16.msra.mxu1 %v2785_v46  ;;  %1297 = vmatpush1.bf16.msra.mxu0 %v2846_v12 }
 0x3ad   :  { %1257 = vmatprep.subr.bf16.mxu1 %v2788_v47  ;;  %1298 = vmatprep.subr.bf16.mxu0 %v2849_v13 }
 0x3b0   :  { %1258 = vmatpush1.bf16.msra.mxu1 %v2790_v49  ;;  %1299 = vmatpush1.bf16.msra.mxu0 %v2855_v14 }
 0x3b1   :  { %1259 = vmatprep.subr.bf16.mxu1 %v2796_v53  ;;  %1300 = vmatprep.subr.bf16.mxu0 %v2859_v15 }
 0x3b4   :  { %1260 = vmatpush1.bf16.msra.mxu1 %v2801_v57  ;;  %1301 = vmatpush1.bf16.msra.mxu0 %v2864_v16 }
 0x3b5   :  { %1261 = vmatprep.subr.bf16.mxu1 %v2804_v58  ;;  %1302 = vmatprep.subr.bf16.mxu0 %v2867_v17 }
 0x3b8   :  { %1262 = vmatpush1.bf16.msra.mxu1 %v2806_v60  ;;  %1303 = vmatpush1.bf16.msra.mxu0 %v2873_v18 }
 0x3b9   :  { %1263 = vmatprep.subr.bf16.mxu1 %v2810_v63  ;;  %1304 = vmatprep.subr.bf16.mxu0 %v2877_v19 }
 0x3bc   :  { %1264 = vmatpush1.bf16.msra.mxu1 %v2814_v3  ;;  %1305 = vmatpush1.bf16.msra.mxu0 %v2882_v20 }
 0x3bd   :  { %1265 = vmatprep.subr.bf16.mxu1 %v2816_v4  ;;  %1306 = vmatprep.subr.bf16.mxu0 %v2885_v21 }
 0x3c0   :  { %1266 = vmatpush1.bf16.msra.mxu1 %v2822_v7  ;;  %1307 = vmatpush1.bf16.msra.mxu0 %v2890_v22 }
 0x3c1   :  { %1362 = vmatprep.subr.bf16.mxu1 %v2396_v35  ;;  %1403 = vmatprep.subr.bf16.mxu0 %v2820_v6  ;;  %v2401_v35 = vld [vmem:[#allocation10 + $0xa0] ss:$16 sps:$4 sm:$0xff]  }
 0x463   :  { %v1174_v37 = vpop.f32.mrf.mxu1  ;;  %v1215_v38 = vpop.f32.mrf.mxu0 }
 0x464   :  { %v1222_v46 = vadd.f32 %v1174_v37, %v3250_v42  ;;  %v1224_v41 = vadd.f32 %v1215_v38, %v2950_v27 }
 0x465   :  { %v1176_v47 = vpop.f32.mrf.mxu1  ;;  %v1217_v49 = vpop.f32.mrf.mxu0 }
 0x466   :  { %v1982_v53 = vmul.f32 -1.442695, %v1222_v46  ;;  %v1223_v36 = vadd.f32 %v1176_v47, %v3251_v0  ;;  %v1984_v59 = vmul.f32 -1.442695, %v1224_v41  ;;  %v1225_v6 = vadd.f32 %v1217_v49, %v2952_v34 }
 0x467   :  { %v1178_v28 = vpop.f32.mrf.mxu1  ;;  %v1219_v40 = vpop.f32.mrf.mxu0 }
 0x468   :  { %2348 = vpow2.f32 %v1982_v53  ;;  %v1983_v33 = vmul.f32 -1.442695, %v1223_v36 }
 0x469   :  { %v1179_v45 = vpop.f32.mrf.mxu1  ;;  %v1220_v43 = vpop.f32.mrf.mxu0 }
 0x46a   :  { %2350 = vpow2.f32 %v1983_v33 }
 0x46b   :  { %2352 = vpow2.f32 %v1984_v59  ;;  %v2276_v59 = vld [vmem:[#allocation13 + $0x38] sm:$0xff]  }
 0x46c   :  { %2354 = vtanh.f32 %v1225_v6  ;;  %v2277_v6 = vld [vmem:[#allocation11 + $0x38] sm:$0xff]  }
 0x475   :  { %v2349_v31 = vpop.eup %2348 }
 0x476   :  { %v1235_v44 = vadd.f32 1.0, %v2349_v31 }
 0x477   :  { %v2351_v62 = vpop.eup %2350 }
 0x478   :  { %2356 = vrcp.f32 %v1235_v44  ;;  %v1236_v2 = vadd.f32 1.0, %v2351_v62  ;;  %v2353_v50 = vpop.eup %2352  ;;  %v2278_v44 = vld [vmem:[#allocation13 + $0x30] sm:$0xff]  }
 0x479   :  { %v2355_v48 = vpop.eup %2354  ;;  %v1237_v24 = vadd.f32 1.0, %v2353_v50  ;;  %v2279_v62 = vld [vmem:[#allocation11 + $0x30] sm:$0xff]   ;;  %v2281_v50 = vld [vmem:[#allocation11 + $0x28] sm:$0xff]  }
 0x47a   :  { %2358 = vrcp.f32 %v1236_v2  ;;  %v2280_v2 = vld [vmem:[#allocation13 + $0x28] sm:$0xff]  }
 0x47b   :  { %2360 = vrcp.f32 %v1237_v24  ;;  %v2286_v24 = vld [vmem:[#allocation13 + $0x10] sm:$0xff]  }
 0x485   :  { %v2357_v5 = vpop.eup %2356 }
 0x486   :  { %v1246_v51 = vmul.f32 %v2357_v5, %v2355_v48  ;;  %v2282_v48 = vld [vmem:[#allocation13 + $0x20] sm:$0xff]  }
 0x487   :  { %v2359_v25 = vpop.eup %2358  ;;  %v2283_v5 = vld [vmem:[#allocation11 + $0x20] sm:$0xff]  }
 0x488   :  { %v1245_v23 = vmul.f32 %v2359_v25, %v3054_v61  ;;  %v2361_v34 = vpop.eup %2360  ;;  %v2399_v61 = vld [vmem:[#allocation10 + $0xc0] ss:$16 sps:$4 sm:$0xff]   ;;  %v2285_v25 = vld [vmem:[#allocation11 + $0x18] sm:$0xff]  }
 0x48a   :  { %v3099_v27 = vadd.f32 %v1246_v51, %v1245_v23  ;;  %v2284_v51 = vld [vmem:[#allocation13 + $0x18] sm:$0xff]   ;;  %v2287_v23 = vld [vmem:[#allocation11 + $0x10] sm:$0xff]  }
 0x48c   :  { %2362 = vtanh.f32 %v3099_v27 }
 0x499   :  { %v2363_v39 = vpop.eup %2362 }
 0x49a   :  { %v3102_v54 = vmul.f32 %v2363_v39, %v2361_v34  ;;  %v2289_v34 = vld [vmem:[#allocation11 + $0x8] sm:$0xff]  }
 0x49b   :  { %v1900_v39 = vld [vmem:[%s3223_s3] ss:$0 sm:$0xff] }
 0x49c   :  { %v1250_v52 = vpack.c.bf16 %v3102_v54, %v3102_v54 }
 0x49e   :  { %1284 = vmatmul.mubr.bf16.vlgmr.msra.gmra.mxu1 %v1250_v52  ;;  %1325 = vmatmul.mubr.bf16.vlgmr.msra.gmra.mxu0 %v1250_v52  ;;  %v2290_v52 = vld [vmem:[#allocation13] sm:$0xff]  }
 0x49f   :  { %1363 = vmatpush1.bf16.msra.mxu1 %v2397_v29  ;;  %1404 = vmatpush1.bf16.msra.mxu0 %v2825_v8  ;;  %v2402_v8 = vld [vmem:[#allocation10 + $0x84] ss:$16 sps:$4 sm:$0xff]  }
 0x4a0   :  { %1364 = vmatprep.subr.bf16.mxu1 %v2398_v30  ;;  %1405 = vmatprep.subr.bf16.mxu0 %v2828_v9  ;;  %v2403_v9 = vld [vmem:[#allocation10 + $0x80] ss:$16 sps:$4 sm:$0xff]  }
 0x4a1   :  { %1394 = vmatprep.mubr.bf16.mxu1 %v3249_v26  ;;  %1435 = vmatprep.mubr.bf16.mxu0 %v3249_v26  ;;  %v2404_v26 = vld [vmem:[#allocation10 + $0x64] ss:$16 sps:$4 sm:$0xff]  }
 0x4a2   :  { %v2291_v29 = vld [vmem:[#allocation11] sm:$0xff]  }
 0x4a3   :  { %1365 = vmatpush1.bf16.msra.mxu1 %v2399_v61  ;;  %1406 = vmatpush1.bf16.msra.mxu0 %v2832_v10  ;;  %v3257_v30 = vld [vmem:[#allocation26_spill] sm:$0xff] }
 0x4a4   :  { %1366 = vmatprep.subr.bf16.mxu1 %v2400_v1  ;;  %1407 = vmatprep.subr.bf16.mxu0 %v2835_v11  ;;  %v270_v61 = vadd.f32 %v1900_v39, %v3257_v30 }
 0x4a6   :  { %v1475_v1 = vpack.c.bf16 %v270_v61, %v270_v61 }
 0x4a7   :  { %1367 = vmatpush1.bf16.msra.mxu1 %v2401_v35  ;;  %1408 = vmatpush1.bf16.msra.mxu0 %v2846_v12  ;;  %v1472_v35 = vpack.c.bf16 %v3011_v56, %v2965_v55  ;;  %v2293_v55 = vld [vmem:[#allocation14 + $0x30] sm:$0xff]   ;;  %v2294_v56 = vld [vmem:[#allocation14 + $0x28] sm:$0xff]  }
 0x4a8   :  { %1368 = vmatprep.subr.bf16.mxu1 %v2402_v8  ;;  %1409 = vmatprep.subr.bf16.mxu0 %v2849_v13  ;;  %v3254_v13 = vld [vmem:[#allocation30_spill] sm:$0xff]  ;;  %v1473_v8 = vpack.c.bf16 %v3102_v54, %v3057_v32  ;;  %v2296_v32 = vld [vmem:[#allocation14 + $0x18] sm:$0xff]   ;;  %v2297_v54 = vld [vmem:[#allocation14 + $0x10] sm:$0xff]  }
 0x4ab   :  { %1369 = vmatpush1.bf16.msra.mxu1 %v2403_v9  ;;  %1410 = vmatpush1.bf16.msra.mxu0 %v2855_v14  ;;  %v2292_v9 = vld [vmem:[#allocation14 + $0x38] sm:$0xff]  }
 0x4ac   :  { %1370 = vmatprep.subr.bf16.mxu1 %v2404_v26  ;;  %1411 = vmatprep.subr.bf16.mxu0 %v2859_v15  ;;  %v2295_v26 = vld [vmem:[#allocation14 + $0x20] sm:$0xff]  }
 0x4af   :  { %1371 = vmatpush1.bf16.msra.mxu1 %v2801_v57  ;;  %1412 = vmatpush1.bf16.msra.mxu0 %v2864_v16  ;;  %v3252_v57 = vmov 0.0  }
 0x4b0   :  { %1372 = vmatprep.subr.bf16.mxu1 %v2804_v58  ;;  %1413 = vmatprep.subr.bf16.mxu0 %v2867_v17 }
 0x4b3   :  { %1373 = vmatpush1.bf16.msra.mxu1 %v2806_v60  ;;  %1414 = vmatpush1.bf16.msra.mxu0 %v2873_v18  ;;  %v3255_v18 = vld [vmem:[#allocation33_spill] sm:$0xff] }
 0x4b4   :  { %1374 = vmatprep.subr.bf16.mxu1 %v2810_v63  ;;  %1415 = vmatprep.subr.bf16.mxu0 %v2877_v19  ;;  %v3253_v63 = vld [vmem:[#allocation29_spill] sm:$0xff] }
 0x4b7   :  { %1375 = vmatpush1.bf16.msra.mxu1 %v2814_v3  ;;  %1416 = vmatpush1.bf16.msra.mxu0 %v2882_v20 }
 0x4b8   :  { %1376 = vmatprep.subr.bf16.mxu1 %v2816_v4  ;;  %1417 = vmatprep.subr.bf16.mxu0 %v2885_v21  ;;  %v3256_v21 = vld [vmem:[#allocation34_spill] sm:$0xff] }
 0x4bb   :  { %1377 = vmatpush1.bf16.msra.mxu1 %v2822_v7  ;;  %1418 = vmatpush1.bf16.msra.mxu0 %v2890_v22 }
 0x4bc   :  { %2077 = vmatprep.subr.bf16.mxu1 %v3252_v57  ;;  %2097 = vmatprep.subr.bf16.mxu0 %v3252_v57 }
 0x55e   :  { %v1285_v58 = vpop.f32.mrf.mxu1  ;;  %v1326_v60 = vpop.f32.mrf.mxu0 }
 0x55f   :  { %v1333_v10 = vadd.f32 %v1285_v58, %v3253_v63  ;;  %v1335_v19 = vadd.f32 %v1326_v60, %v3255_v18  ;;  %v2298_v58 = vld [vmem:[#allocation14 + $0x8] sm:$0xff]   ;;  %v2299_v60 = vld [vmem:[#allocation14] sm:$0xff]  }
 0x560   :  { %v1287_v11 = vpop.f32.mrf.mxu1  ;;  %v1328_v3 = vpop.f32.mrf.mxu0 }
 0x561   :  { %v1985_v12 = vmul.f32 -1.442695, %v1333_v10  ;;  %v1334_v14 = vadd.f32 %v1287_v11, %v3254_v13  ;;  %v1987_v20 = vmul.f32 -1.442695, %v1335_v19  ;;  %v1336_v22 = vadd.f32 %v1328_v3, %v3256_v21  ;;  %v3258_v11 = vld [vmem:[#allocation31_spill] sm:$0xff] }
 0x562   :  { %v1289_v4 = vpop.f32.mrf.mxu1  ;;  %v1330_v15 = vpop.f32.mrf.mxu0 }
 0x563   :  { %2364 = vpow2.f32 %v1985_v12  ;;  %v1986_v16 = vmul.f32 -1.442695, %v1334_v14  ;;  %v3259_v4 = vld [vmem:[#allocation32_spill] sm:$0xff] }
 0x564   :  { %v1290_v7 = vpop.f32.mrf.mxu1  ;;  %v1331_v17 = vpop.f32.mrf.mxu0 }
 0x565   :  { %2366 = vpow2.f32 %v1986_v16 }
 0x566   :  { %2368 = vpow2.f32 %v1987_v20  ;;  %v3260_v20 = vld [vmem:[#allocation35_spill] sm:$0xff] }
 0x567   :  { %2370 = vtanh.f32 %v1336_v22 }
 0x570   :  { %v2365_v37 = vpop.eup %2364 }
 0x571   :  { %v1346_v38 = vadd.f32 1.0, %v2365_v37  ;;  %v3261_v37 = vld [vmem:[#allocation36_spill] sm:$0xff] }
 0x572   :  { %v2367_v42 = vpop.eup %2366 }
 0x573   :  { %2372 = vrcp.f32 %v1346_v38  ;;  %v1347_v46 = vadd.f32 1.0, %v2367_v42  ;;  %v2369_v47 = vpop.eup %2368 }
 0x574   :  { %v2371_v49 = vpop.eup %2370  ;;  %v1348_v28 = vadd.f32 1.0, %v2369_v47 }
 0x575   :  { %2374 = vrcp.f32 %v1347_v46 }
 0x576   :  { %2376 = vrcp.f32 %v1348_v28 }
 0x580   :  { %v2373_v53 = vpop.eup %2372 }
 0x581   :  { %v1357_v0 = vmul.f32 %v2373_v53, %v2371_v49  ;;  %v1991_v53 = vld [vmem:[%s3229_s9] ss:$0 sm:$0xff] }
 0x582   :  { %v2375_v36 = vpop.eup %2374 }
 0x583   :  { %v1356_v40 = vmul.f32 %v2375_v36, %v3099_v27  ;;  %v2377_v45 = vpop.eup %2376  ;;  %v2288_v27 = vld [vmem:[#allocation13 + $0x8] sm:$0xff]  }
 0x585   :  { %v3137_v33 = vadd.f32 %v1357_v0, %v1356_v40 }
 0x587   :  { %2378 = vtanh.f32 %v3137_v33 }
 0x594   :  { %v2379_v43 = vpop.eup %2378 }
 0x595   :  { %v3140_v41 = vmul.f32 %v2379_v43, %v2377_v45 }
 0x597   :  { %v1361_v31 = vpack.c.bf16 %v3140_v41, %v3140_v41 }
 0x599   :  { %1395 = vmatmul.mubr.bf16.vlgmr.msra.gmra.mxu1 %v1361_v31  ;;  %1436 = vmatmul.mubr.bf16.vlgmr.msra.gmra.mxu0 %v1361_v31 }
 0x59a   :  { %2078 = vmatpush3.bf16.msra.mxu1 %v2276_v59  ;;  %2098 = vmatpush3.bf16.msra.mxu0 %v2277_v6 }
 0x59b   :  { %2079 = vmatprep.subr.bf16.mxu1 %v3252_v57  ;;  %2099 = vmatprep.subr.bf16.mxu0 %v3252_v57 }
 0x59c   :  { %2093 = vmatprep.mubr.msk.bf16.mxu1 %vm2634_vm0, %v3252_v57  ;;  %2113 = vmatprep.mubr.msk.bf16.mxu0 %vm2634_vm0, %v3252_v57 }
 0x59e   :  { %2080 = vmatpush3.bf16.msra.mxu1 %v2278_v44  ;;  %2100 = vmatpush3.bf16.msra.mxu0 %v2279_v62 }
 0x59f   :  { %2081 = vmatprep.subr.bf16.mxu1 %v3252_v57  ;;  %2101 = vmatprep.subr.bf16.mxu0 %v3252_v57 }
 0x5a2   :  { %2082 = vmatpush3.bf16.msra.mxu1 %v2280_v2  ;;  %2102 = vmatpush3.bf16.msra.mxu0 %v2281_v50 }
 0x5a3   :  { %2083 = vmatprep.subr.bf16.mxu1 %v3252_v57  ;;  %2103 = vmatprep.subr.bf16.mxu0 %v3252_v57 }
 0x5a6   :  { %2084 = vmatpush3.bf16.msra.mxu1 %v2282_v48  ;;  %2104 = vmatpush3.bf16.msra.mxu0 %v2283_v5 }
 0x5a7   :  { %2085 = vmatprep.subr.bf16.mxu1 %v3252_v57  ;;  %2105 = vmatprep.subr.bf16.mxu0 %v3252_v57 }
 0x5aa   :  { %2086 = vmatpush3.bf16.msra.mxu1 %v2284_v51  ;;  %2106 = vmatpush3.bf16.msra.mxu0 %v2285_v25 }
 0x5ab   :  { %2087 = vmatprep.subr.bf16.mxu1 %v3252_v57  ;;  %2107 = vmatprep.subr.bf16.mxu0 %v3252_v57 }
 0x5ae   :  { %2088 = vmatpush3.bf16.msra.mxu1 %v2286_v24  ;;  %2108 = vmatpush3.bf16.msra.mxu0 %v2287_v23 }
 0x5af   :  { %2089 = vmatprep.subr.bf16.mxu1 %v3252_v57  ;;  %2109 = vmatprep.subr.bf16.mxu0 %v3252_v57 }
 0x5b2   :  { %2090 = vmatpush3.bf16.msra.mxu1 %v2288_v27  ;;  %2110 = vmatpush3.bf16.msra.mxu0 %v2289_v34 }
 0x5b3   :  { %2091 = vmatprep.subr.bf16.mxu1 %v3252_v57  ;;  %2111 = vmatprep.subr.bf16.mxu0 %v3252_v57 }
 0x5b6   :  { %2092 = vmatpush3.bf16.msra.mxu1 %v2290_v52  ;;  %2112 = vmatpush3.bf16.msra.mxu0 %v2291_v29 }
 0x5b7   :  { %2125 = vmatprep.subr.bf16.mxu1 %v3252_v57 }
 0x5b9   :  { %2094 = vmatmul.mubr.bf16.vlgmr.msra.gmra.mxu1 %v1475_v1  ;;  %2114 = vmatmul.mubr.bf16.vlgmr.msra.gmra.mxu0 %v1472_v35 }
 0x5ba   :  { %2117 = vmatprep.mubr.msk.bf16.mxu0 %vm2634_vm0, %v3252_v57  ;;  %2141 = vmatprep.mubr.msk.bf16.mxu1 %vm2634_vm0, %v3252_v57 }
 0x5bb   :  { %2126 = vmatpush3.bf16.msra.mxu1 %v2292_v9 }
 0x5bc   :  { %2127 = vmatprep.subr.bf16.mxu1 %v3252_v57 }
 0x5bf   :  { %2128 = vmatpush3.bf16.msra.mxu1 %v2293_v55 }
 0x5c0   :  { %2129 = vmatprep.subr.bf16.mxu1 %v3252_v57 }
 0x5c1   :  { %2118 = vmatmul.mubr.bf16.gmra.mxu0 %v1473_v8 }
 0x5c2   :  { %2121 = vmatprep.mubr.msk.bf16.mxu0 %vm2634_vm0, %v3252_v57 }
 0x5c3   :  { %2130 = vmatpush3.bf16.msra.mxu1 %v2294_v56 }
 0x5c4   :  { %2131 = vmatprep.subr.bf16.mxu1 %v3252_v57 }
 0x5c7   :  { %2132 = vmatpush3.bf16.msra.mxu1 %v2295_v26 }
 0x5c8   :  { %2133 = vmatprep.subr.bf16.mxu1 %v3252_v57 }
 0x5cb   :  { %2134 = vmatpush3.bf16.msra.mxu1 %v2296_v32 }
 0x5cc   :  { %2135 = vmatprep.subr.bf16.mxu1 %v3252_v57 }
 0x5cf   :  { %2136 = vmatpush3.bf16.msra.mxu1 %v2297_v54  ;;  %v2008_v54 = vld [vmem:[%s3231_s11] ss:$0 sm:$0xff]  ;;  %s2636_s11 = smov [#allocation17]  }
 0x5d0   :  { %2137 = vmatprep.subr.bf16.mxu1 %v3252_v57  ;;  %s1880_s19 = sshll.u32 %s2636_s11, 4  ;;  %s1881_s19 = int_to_ptr.vmem [resolvable:$true] %s1880_s19 }
 0x5d1   :  { %s2565_s7 = scalar_lea.vmem %s1881_s19, 768  ;;  %p2570_p13 = scmp.lt.s32.totalorder %s1881_s19, %s1881_s19 }
 0x5d2   :  { %p2566_p12 = scmp.ne.s32.totalorder %s1881_s19, %s2565_s7  ;;  %p2571_p0 = scmp.lt.s32.totalorder %s2565_s7, %s2565_s7 }
 0x5d3   :  { %2138 = vmatpush3.bf16.msra.mxu1 %v2298_v58 }
 0x5d4   :  { %2139 = vmatprep.subr.bf16.mxu1 %v3252_v57  ;;  %p2572_p1 = por %p2571_p0, %p2570_p13 }
 0x5d6   :  { %p2573_p2 = pnand %p2572_p1, %p2566_p12 }
 0x5d7   :  { %2140 = vmatpush3.bf16.msra.mxu1 %v2299_v60 }
 0x659   :  { %v1396_v63 = vpop.f32.mrf.mxu1  ;;  %v1437_v10 = vpop.f32.mrf.mxu0 }
 0x65a   :  { %v1444_v3 = vadd.f32 %v1396_v63, %v3258_v11  ;;  %v1446_v21 = vadd.f32 %v1437_v10, %v3260_v20 }
 0x65b   :  { %v1398_v12 = vpop.f32.mrf.mxu1  ;;  %v1439_v13 = vpop.f32.mrf.mxu0 }
 0x65c   :  { %v1988_v14 = vmul.f32 -1.442695, %v1444_v3  ;;  %v1445_v15 = vadd.f32 %v1398_v12, %v3259_v4  ;;  %v1990_v22 = vmul.f32 -1.442695, %v1446_v21  ;;  %v1447_v38 = vadd.f32 %v1439_v13, %v3261_v37 }
 0x65d   :  { %v1400_v16 = vpop.f32.mrf.mxu1  ;;  %v1441_v7 = vpop.f32.mrf.mxu0 }
 0x65e   :  { %2380 = vpow2.f32 %v1988_v14  ;;  %v1989_v17 = vmul.f32 -1.442695, %v1445_v15 }
 0x65f   :  { %v1401_v18 = vpop.f32.mrf.mxu1  ;;  %v1442_v19 = vpop.f32.mrf.mxu0 }
 0x660   :  { %2382 = vpow2.f32 %v1989_v17 }
 0x661   :  { %2384 = vpow2.f32 %v1990_v22 }
 0x662   :  { %2386 = vtanh.f32 %v1447_v38 }
 0x66b   :  { %v2381_v42 = vpop.eup %2380 }
 0x66c   :  { %v1457_v46 = vadd.f32 1.0, %v2381_v42 }
 0x66d   :  { %v2383_v47 = vpop.eup %2382 }
 0x66e   :  { %2388 = vrcp.f32 %v1457_v46  ;;  %v1458_v49 = vadd.f32 1.0, %v2383_v47  ;;  %v2385_v0 = vpop.eup %2384 }
 0x66f   :  { %v2387_v40 = vpop.eup %2386  ;;  %v1459_v2 = vadd.f32 1.0, %v2385_v0 }
 0x670   :  { %2390 = vrcp.f32 %v1458_v49 }
 0x671   :  { %2392 = vrcp.f32 %v1459_v2 }
 0x679   :  { %v1581_v36 = vpop.f32.mrf.mxu1  ;;  %v1685_v28 = vpop.f32.mrf.mxu0 }
 0x67a   :  { %v3191_v45 = vadd.f32 %v1991_v53, %v1581_v36 }
 0x67b   :  { %v2389_v43 = vpop.eup %2388  ;;  %v2095_v59 = vpop.f32.mrf.mxu1 }
 0x67c   :  { %v2115_v6 = vpop.f32.mrf.mxu0  ;;  %v1468_v31 = vmul.f32 %v2389_v43, %v2387_v40  ;;  %v1708_v44 = vadd.f32 %v1685_v28, %v3191_v45 }
 0x67d   :  { %v2391_v62 = vpop.eup %2390  ;;  %v1584_v50 = vpop.f32.mrf.mxu1 }
 0x67e   :  { %v1688_v48 = vpop.f32.mrf.mxu0  ;;  %v1467_v5 = vmul.f32 %v2391_v62, %v3137_v33  ;;  %v1714_v51 = vmax.f32 %v1708_v44, 0.0  ;;  %v2393_v55 = vpop.eup %2392 }
 0x67f   :  { %v1709_v25 = vadd.f32 %v1688_v48, %v3191_v45  ;;  %v2096_v24 = vpop.f32.mrf.mxu1 }
 0x680   :  { %v2116_v23 = vpop.f32.mrf.mxu0  ;;  %v1469_v27 = vadd.f32 %v1468_v31, %v1467_v5  ;;  %1720 = vst [vmem:[#allocation17] sm:$0xff] %v1714_v51 }
 0x681   :  { %v1715_v34 = vmax.f32 %v1709_v25, 0.0 }
 0x682   :  { %v1693_v39 = vpop.f32.mrf.mxu0  ;;  %2394 = vtanh.f32 %v1469_v27 }
 0x683   :  { %1721 = vst [vmem:[#allocation17 + $0x8] sm:$0xff] %v1715_v34  ;;  %v1726_v52 = vpack.c.bf16 %v1715_v34, %v1714_v51  ;;  %v1710_v29 = vadd.f32 %v1693_v39, %v3191_v45 }
 0x684   :  { %v2119_v30 = vpop.f32.mrf.mxu0 }
 0x685   :  { %v1716_v61 = vmax.f32 %v1710_v29, 0.0  ;;  %2142 = vmatmul.mubr.bf16.vlgmr.msra.gmra.mxu1 %v1726_v52 }
 0x686   :  { %v1696_v1 = vpop.f32.mrf.mxu0  ;;  %2145 = vmatprep.mubr.msk.bf16.mxu1 %vm2634_vm0, %v3252_v57 }
 0x687   :  { %1722 = vst [vmem:[#allocation17 + $0x10] sm:$0xff] %v1716_v61  ;;  %v1711_v33 = vadd.f32 %v1696_v1, %v3191_v45 }
 0x688   :  { %v2120_v35 = vpop.f32.mrf.mxu0 }
 0x689   :  { %v1717_v8 = vmax.f32 %v1711_v33, 0.0 }
 0x68b   :  { %1723 = vst [vmem:[#allocation17 + $0x18] sm:$0xff] %v1717_v8  ;;  %v1727_v9 = vpack.c.bf16 %v1717_v8, %v1716_v61 }
 0x68d   :  { %2146 = vmatmul.mubr.bf16.gmra.mxu1 %v1727_v9 }
 0x68e   :  { %2149 = vmatprep.mubr.msk.bf16.mxu1 %vm2634_vm0, %v3252_v57 }
 0x68f   :  { %v2395_v56 = vpop.eup %2394 }
 0x690   :  { %v1471_v26 = vmul.f32 %v2395_v56, %v2393_v55 }
 0x692   :  { %v1474_v32 = vpack.c.bf16 %v1471_v26, %v3140_v41 }
 0x694   :  { %2122 = vmatmul.mubr.bf16.gmra.mxu0 %v1474_v32 }
 0x745   :  { %v1834_v58 = vpop.f32.mrf.mxu1 }
 0x746   :  { %v1835_v60 = vadd.f32 %v2008_v54, %v1834_v58 }
 0x747   :  { %v2143_v63 = vpop.f32.mrf.mxu1 }
 0x748   :  { %1857 = vst [vmem:[#allocation16] sm:$0xff] %v1835_v60 }
 0x749   :  { %v1837_v10 = vpop.f32.mrf.mxu1 }
 0x74a   :  { %v1838_v11 = vadd.f32 %v2008_v54, %v1837_v10 }
 0x74b   :  { %v2144_v3 = vpop.f32.mrf.mxu1 }
 0x74c   :  { %1858 = vst [vmem:[#allocation16 + $0x8] sm:$0xff] %v1838_v11 }
 0x74d   :  { %v1842_v12 = vpop.f32.mrf.mxu1 }
 0x74e   :  { %v1843_v57 = vadd.f32 %v2008_v54, %v1842_v12 }
 0x74f   :  { %v2147_v13 = vpop.f32.mrf.mxu1 }
 0x750   :  { %1859 = vst [vmem:[#allocation16 + $0x10] sm:$0xff] %v1843_v57 }
 0x751   :  { %v1845_v14 = vpop.f32.mrf.mxu1 }
 0x752   :  { %v1846_v4 = vadd.f32 %v2008_v54, %v1845_v14 }
 0x753   :  { %v2148_v41 = vpop.f32.mrf.mxu1 }
 0x754   :  { %1860 = vst [vmem:[#allocation16 + $0x18] sm:$0xff] %v1846_v4  ;;  %v1701_v15 = vpop.f32.mrf.mxu0 }
 0x755   :  { %v1712_v16 = vadd.f32 %v1701_v15, %v3191_v45 }
 0x756   :  { %v2123_v7 = vpop.f32.mrf.mxu0 }
 0x757   :  { %v1718_v17 = vmax.f32 %v1712_v16, 0.0 }
 0x758   :  { %v1704_v18 = vpop.f32.mrf.mxu0 }
 0x759   :  { %1724 = vst [vmem:[#allocation17 + $0x20] sm:$0xff] %v1718_v17  ;;  %v1713_v19 = vadd.f32 %v1704_v18, %v3191_v45 }
 0x75a   :  { %v2124_v20 = vpop.f32.mrf.mxu0 }
 0x75b   :  { %v1719_v21 = vmax.f32 %v1713_v19, 0.0 }
 0x75d   :  { %1725 = vst [vmem:[#allocation17 + $0x28] sm:$0xff] %v1719_v21  ;;  %v1728_v22 = vpack.c.bf16 %v1719_v21, %v1718_v17 }
 0x75f   :  { %2150 = vmatmul.mubr.bf16.gmra.mxu1 %v1728_v22 }
 0x760   :  { %2576 = shalt.err (!%p2573_p2)
}
 0x761   :  { %1886 = dma.vmem_to_hbm [thread:$0]  %s1881_s19, 768, %s3233_s13, [#allocation18], %s2627_s28, %s2627_s28, %s2628_s29  }
 0x762   :  { %s2637_s22 = smov [#allocation16]  }
 0x763   :  { %s1868_s0 = sshll.u32 %s2637_s22, 4  ;;  %s1869_s0 = int_to_ptr.vmem [resolvable:$true] %s1868_s0 }
 0x764   :  { %s2585_s1 = scalar_lea.vmem %s1869_s0, 768  ;;  %p2590_p4 = scmp.lt.s32.totalorder %s1869_s0, %s1869_s0 }
 0x765   :  { %p2586_p3 = scmp.ne.s32.totalorder %s1869_s0, %s2585_s1  ;;  %p2591_p5 = scmp.lt.s32.totalorder %s2585_s1, %s2585_s1 }
 0x767   :  { %p2592_p6 = por %p2591_p5, %p2590_p4 }
 0x769   :  { %p2593_p7 = pnand %p2592_p6, %p2586_p3 }
 0x81f   :  { %v1850_v37 = vpop.f32.mrf.mxu1 }
 0x820   :  { %v1851_v38 = vadd.f32 %v2008_v54, %v1850_v37 }
 0x821   :  { %v2151_v42 = vpop.f32.mrf.mxu1 }
 0x822   :  { %1861 = vst [vmem:[#allocation16 + $0x20] sm:$0xff] %v1851_v38 }
 0x823   :  { %v1853_v46 = vpop.f32.mrf.mxu1 }
 0x824   :  { %v1854_v47 = vadd.f32 %v2008_v54, %v1853_v46 }
 0x825   :  { %v2152_v49 = vpop.f32.mrf.mxu1 }
 0x826   :  { %1862 = vst [vmem:[#allocation16 + $0x28] sm:$0xff] %v1854_v47 }
 0x827   :  { %2596 = shalt.err (!%p2593_p7)
}
 0x828   :  { %1874 = dma.vmem_to_hbm [thread:$0]  %s1869_s0, 768, %s3232_s12, [#allocation4], %s2627_s28, %s2627_s28, %s2628_s29  }
 0x829   :  { %2615 = dma.done.wait [#allocation4], 768  }
 0x82a   :  { %2616 = vsyncadd [#allocation4], 4294966528 }
 0x82b   :  { %2617 = dma.done.wait [#allocation18], 768  }
 0x82c   :  { %2618 = vsyncadd [#allocation18], 4294966528 }
 0x82d   :  { %1893 = vsyncpa [#allocation3], 1 }
 0x82e   :  { %1894 = vsyncpa [#allocation6], 1 }
 0x82f   :  { %1895 = vsyncpa [#allocation9], 1 }
 0x830   :  { %1896 = vsyncpa [#allocation12], 1 }
 0x831   :  { %1897 = vsyncpa [#allocation15], 1 }
 0x832   :  { %1898 = vsyncpa [#allocation4], 1 }
 0x833   :  { %1899 = vsyncpa [#allocation18], 1 }

</bundles_post_ra>
